<compile_context>
chip_gen: v6e
topology: v6e:2x2x1
jax: 0.10.0
libtpu: 0.0.40
codegen_flags: <defaults>
</compile_context>

<pallas_src>
import functools

import jax
import jax.numpy as jnp
from jax.experimental import pallas as pl
from jax.experimental.pallas import tpu as pltpu


# ----------------------------------------------------------------------------
# Pallas kernel: whole forward pass (2-layer LSTM recurrence + projection)
# ----------------------------------------------------------------------------
def _lstm_text_gen_kernel(
    x_ref,      # (T*B, V)  bf16   inputs, time-major rows (row = t*B + b)
    wih0_ref,   # (V, 4H)   bf16   layer-0 input weights (i/f/o cols * 0.5)
    whh0_ref,   # (H, 4H)   bf16   layer-0 recurrent weights (i/f/o cols * 0.5)
    b0_ref,     # (1, 4H)   f32    layer-0 combined bias (i/f/o entries * 0.5)
    w1_ref,     # (2H, 4H)  bf16   fused [W_ih1; W_hh1] (i/f/o cols * 0.5)
    b1_ref,     # (1, 4H)   f32    layer-1 combined bias (i/f/o entries * 0.5)
    wph_ref,    # (H, V)    bf16   output projection
    bp_ref,     # (1, V)    f32    output bias
    out_ref,    # (T*B, V)  f32    output, time-major rows
    hseq_ref,   # (T*B, H)  f32    VMEM scratch: per-step h1 stream
    *,
    seq_len,
    batch,
):
    H = whh0_ref.shape[0]

    # --- Hoisted non-sequential work: layer-0 input contribution for ALL time
    # steps in one MXU op (M = T*B) with the layer-0 bias folded in (one bulk
    # VPU add instead of T per-step broadcast+adds). ---
    xg = (jnp.dot(x_ref[...], wih0_ref[...],
                  preferred_element_type=jnp.float32)
          + b0_ref[...])                                        # (T*B, 4H) f32

    whh0 = whh0_ref[...]
    w1 = w1_ref[...]
    # Pre-broadcast b1 once; reused by every unrolled iteration.
    b1 = jnp.broadcast_to(b1_ref[...], (batch, 4 * H))

    def gate_activations(pre):
        # i/f/o pre-activations arrive pre-scaled by 0.5, so a single
        # full-width tanh (one EUP transit) yields both the tanh gate and, via
        # sigmoid(x) = 0.5*tanh(x/2) + 0.5, the sigmoid gates on the VPU.
        # PyTorch gate ordering: [i, f, g, o].
        t = jnp.tanh(pre)
        s = 0.5 * t + 0.5
        i_g = s[:, 0 * H:1 * H]
        f_g = s[:, 1 * H:2 * H]
        g_g = t[:, 2 * H:3 * H]
        o_g = s[:, 3 * H:4 * H]
        return i_g, f_g, g_g, o_g

    zeros_f32 = jnp.zeros((batch, H), jnp.float32)
    zeros_bf16 = jnp.zeros((batch, H), jnp.bfloat16)
    h0b, c0 = zeros_bf16, zeros_f32     # h-state carried in bf16 (matmul dtype)
    h1b, c1 = zeros_bf16, zeros_f32

    # seq_len is small & static -> fully unrolled serial recurrence.
    # TODO(synk): for long sequences switch to lax.fori_loop (small unroll)
    # writing into hseq_ref to bound vreg live ranges and compile time.
    for t in range(seq_len):
        # ---- layer 0 ----
        g0 = (xg[t * batch:(t + 1) * batch, :]
              + jnp.dot(h0b, whh0, preferred_element_type=jnp.float32))
        i0, f0, gg0, o0 = gate_activations(g0)
        c0 = f0 * c0 + i0 * gg0
        h0b = (o0 * jnp.tanh(c0)).astype(jnp.bfloat16)   # single cast, reused

        # ---- layer 1: fused input+recurrent matmul (one MXU transit) ----
        h01 = jnp.concatenate([h0b, h1b], axis=1)        # (B, 2H) bf16
        g1 = jnp.dot(h01, w1, preferred_element_type=jnp.float32) + b1
        i1, f1, gg1, o1 = gate_activations(g1)
        c1 = f1 * c1 + i1 * gg1
        h1 = o1 * jnp.tanh(c1)
        h1b = h1.astype(jnp.bfloat16)                    # single cast, reused

        # Stream this step's h1 into the VMEM scratch (idle vst slot); avoids
        # an end-of-kernel concatenate and caps live ranges across the unroll.
        hseq_ref[t * batch:(t + 1) * batch, :] = h1

    # ---- Hoisted output projection: one (T*B, H) @ (H, V) matmul and a single
    # contiguous store, entirely off the serial critical path. ----
    hseq = hseq_ref[...].astype(jnp.bfloat16)
    out_ref[...] = (jnp.dot(hseq, wph_ref[...],
                            preferred_element_type=jnp.float32)
                    + bp_ref[...])


# ----------------------------------------------------------------------------
# Wrapper
# ----------------------------------------------------------------------------
@jax.jit
def text_generation_forward(x, kparams):
    """x: (T, B, V) float32; returns (T, B, V) float32."""
    T, B, V = x.shape
    H = kparams["whh0"].shape[0]
    x2d = x.reshape(T * B, V).astype(jnp.bfloat16)

    kernel = functools.partial(_lstm_text_gen_kernel, seq_len=T, batch=B)
    vmem = pl.BlockSpec(memory_space=pltpu.MemorySpace.VMEM)

    out2d = pl.pallas_call(
        kernel,
        out_shape=jax.ShapeDtypeStruct((T * B, V), jnp.float32),
        in_specs=[vmem] * 8,
        out_specs=vmem,
        scratch_shapes=[pltpu.VMEM((T * B, H), jnp.float32)],
    )(
        x2d,
        kparams["wih0"], kparams["whh0"], kparams["b0"],
        kparams["w1"], kparams["b1"],
        kparams["w_ph"], kparams["b_p"],
    )
    return out2d.reshape(T, B, V)


# ----------------------------------------------------------------------------
# Parameters
# ----------------------------------------------------------------------------
def init_raw_params(key, vocab_size, hidden):
    """Raw float32 parameters in PyTorch nn.LSTM(V, H, 2) layout + W_ph/b_p."""
    ks = jax.random.split(key, 10)
    s = 1.0 / jnp.sqrt(hidden)

    def u(k, shape):
        return jax.random.uniform(k, shape, jnp.float32, minval=-s, maxval=s)

    return {
        "weight_ih_l0": u(ks[0], (4 * hidden, vocab_size)),
        "weight_hh_l0": u(ks[1], (4 * hidden, hidden)),
        "bias_ih_l0": u(ks[2], (4 * hidden,)),
        "bias_hh_l0": u(ks[3], (4 * hidden,)),
        "weight_ih_l1": u(ks[4], (4 * hidden, hidden)),
        "weight_hh_l1": u(ks[5], (4 * hidden, hidden)),
        "bias_ih_l1": u(ks[6], (4 * hidden,)),
        "bias_hh_l1": u(ks[7], (4 * hidden,)),
        # kaiming_normal_(W_ph, nonlinearity='tanh'): std = (5/3)/sqrt(fan_in)
        "W_ph": jax.random.normal(ks[8], (hidden, vocab_size), jnp.float32)
                * ((5.0 / 3.0) / jnp.sqrt(hidden)),
        "b_p": jnp.zeros((1, vocab_size), jnp.float32),  # torch (1,1,V) broadcasts identically
    }


def prepare_kernel_params(raw, hidden):
    """Kernel layout: transposed, bf16, layer-1 weights fused, and the i/f/o
    gate columns pre-scaled by 0.5 (exact) so the kernel needs only one tanh
    EUP pass per gate block."""
    H = hidden
    bf = jnp.bfloat16
    scale = jnp.concatenate([
        jnp.full((H,), 0.5, jnp.float32),   # i (sigmoid)
        jnp.full((H,), 0.5, jnp.float32),   # f (sigmoid)
        jnp.ones((H,), jnp.float32),        # g (tanh)
        jnp.full((H,), 0.5, jnp.float32),   # o (sigmoid)
    ])                                       # (4H,)

    wih0 = (raw["weight_ih_l0"].T * scale[None, :]).astype(bf)         # (V, 4H)
    whh0 = (raw["weight_hh_l0"].T * scale[None, :]).astype(bf)         # (H, 4H)
    b0 = ((raw["bias_ih_l0"] + raw["bias_hh_l0"]) * scale)[None, :]    # (1, 4H)

    w1 = (jnp.concatenate([raw["weight_ih_l1"].T,
                           raw["weight_hh_l1"].T], axis=0)
          * scale[None, :]).astype(bf)                                 # (2H, 4H)
    b1 = ((raw["bias_ih_l1"] + raw["bias_hh_l1"]) * scale)[None, :]    # (1, 4H)

    return {
        "wih0": wih0, "whh0": whh0, "b0": b0,
        "w1": w1, "b1": b1,
        "w_ph": raw["W_ph"].astype(bf), "b_p": raw["b_p"],
    }


# ----------------------------------------------------------------------------
# Pure-JAX reference (mirrors torch.nn.LSTM(V, H, 2) + einsum projection with
# the same bf16 weight/activation quantization and f32 accumulation as the
# kernel, but using the standard, unfused, unscaled formulation).
# ----------------------------------------------------------------------------
@jax.jit
def reference_forward(x, raw):
    T, B, V = x.shape
    H = raw["weight_hh_l0"].shape[1]
    bf = jnp.bfloat16

    wih0 = raw["weight_ih_l0"].T.astype(bf)
    whh0 = raw["weight_hh_l0"].T.astype(bf)
    b0 = (raw["bias_ih_l0"] + raw["bias_hh_l0"])[None, :]
    wih1 = raw["weight_ih_l1"].T.astype(bf)
    whh1 = raw["weight_hh_l1"].T.astype(bf)
    b1 = (raw["bias_ih_l1"] + raw["bias_hh_l1"])[None, :]
    w_ph = raw["W_ph"].astype(bf)
    b_p = raw["b_p"]

    def act(g):
        return (jax.nn.sigmoid(g[:, :H]),
                jax.nn.sigmoid(g[:, H:2 * H]),
                jnp.tanh(g[:, 2 * H:3 * H]),
                jax.nn.sigmoid(g[:, 3 * H:]))

    def step(carry, x_t):
        h0, c0, h1, c1 = carry
        g0 = (jnp.dot(x_t, wih0, preferred_element_type=jnp.float32)
              + jnp.dot(h0.astype(bf), whh0, preferred_element_type=jnp.float32)
              + b0)
        i0, f0, gg0, o0 = act(g0)
        c0 = f0 * c0 + i0 * gg0
        h0 = o0 * jnp.tanh(c0)

        g1 = (jnp.dot(h0.astype(bf), wih1, preferred_element_type=jnp.float32)
              + jnp.dot(h1.astype(bf), whh1, preferred_element_type=jnp.float32)
              + b1)
        i1, f1, gg1, o1 = act(g1)
        c1 = f1 * c1 + i1 * gg1
        h1 = o1 * jnp.tanh(c1)
        return (h0, c0, h1, c1), h1

    zeros = jnp.zeros((B, H), jnp.float32)
    _, h1_seq = jax.lax.scan(step, (zeros, zeros, zeros, zeros),
                             x.astype(bf))                       # (T, B, H)

    h2d = h1_seq.reshape(T * B, H).astype(bf)
    out2d = (jnp.dot(h2d, w_ph, preferred_element_type=jnp.float32) + b_p)
    return out2d.reshape(T, B, V)


if __name__ == "__main__":
    T, B, V, H = 8, 8, 64, 32   # seq_length, batch, vocabulary_size, lstm_num_hidden

    key = jax.random.PRNGKey(0)
    kx, kp = jax.random.split(key)
    x = jax.random.normal(kx, (T, B, V), jnp.float32)

    raw = init_raw_params(kp, V, H)
    kparams = prepare_kernel_params(raw, H)

    out = jax.block_until_ready(text_generation_forward(x, kparams))
    ref = jax.block_until_ready(reference_forward(x, raw))

    assert out.shape == (T, B, V)
    max_err = jnp.max(jnp.abs(out - ref))
    assert jnp.allclose(out, ref, atol=1e-2, rtol=1e-2), (
        f"Pallas output mismatch vs reference (max abs diff = {max_err})")

    print("KERNEL_OK")
</pallas_src>

<mosaic_0001>
module attributes {stable_mosaic.version = 11 : i64} {
  func.func @_lstm_text_gen_kernel(%arg0: memref<64x64xbf16, #tpu.memory_space<vmem>>, %arg1: memref<64x128xbf16, #tpu.memory_space<vmem>>, %arg2: memref<32x128xbf16, #tpu.memory_space<vmem>>, %arg3: memref<1x128xf32, #tpu.memory_space<vmem>>, %arg4: memref<64x128xbf16, #tpu.memory_space<vmem>>, %arg5: memref<1x128xf32, #tpu.memory_space<vmem>>, %arg6: memref<32x64xbf16, #tpu.memory_space<vmem>>, %arg7: memref<1x64xf32, #tpu.memory_space<vmem>>, %arg8: memref<64x64xf32, #tpu.memory_space<vmem>>, %arg9: memref<64x32xf32, #tpu.memory_space<vmem>>) attributes {dimension_semantics = [], scalar_prefetch = 0 : i64, scratch_operands = 1 : i64, tpu.core_type = #tpu.core_type<tc>} {
    %c0 = arith.constant 0 : index
    %c0_0 = arith.constant 0 : index
    %0 = vector.load %arg0[%c0, %c0_0] : memref<64x64xbf16, #tpu.memory_space<vmem>>, vector<64x64xbf16>
    %c0_1 = arith.constant 0 : index
    %c0_2 = arith.constant 0 : index
    %1 = vector.load %arg1[%c0_1, %c0_2] : memref<64x128xbf16, #tpu.memory_space<vmem>>, vector<64x128xbf16>
    %cst = arith.constant dense<0.000000e+00> : vector<64x128xf32>
    %2 = tpu.matmul %0, %1, %cst {dimension_numbers = #tpu.dot_dimension_numbers<[1], [0], [0], [1], [0, 0, 1, 1], [], []>} : vector<64x64xbf16>, vector<64x128xbf16>, vector<64x128xf32> -> vector<64x128xf32>
    %c0_3 = arith.constant 0 : index
    %c0_4 = arith.constant 0 : index
    %3 = vector.load %arg3[%c0_3, %c0_4] : memref<1x128xf32, #tpu.memory_space<vmem>>, vector<1x128xf32>
    %4 = vector.broadcast %3 : vector<1x128xf32> to vector<64x128xf32>
    %5 = arith.addf %2, %4 : vector<64x128xf32>
    %c0_5 = arith.constant 0 : index
    %c0_6 = arith.constant 0 : index
    %6 = vector.load %arg2[%c0_5, %c0_6] : memref<32x128xbf16, #tpu.memory_space<vmem>>, vector<32x128xbf16>
    %c0_7 = arith.constant 0 : index
    %c0_8 = arith.constant 0 : index
    %7 = vector.load %arg4[%c0_7, %c0_8] : memref<64x128xbf16, #tpu.memory_space<vmem>>, vector<64x128xbf16>
    %c0_9 = arith.constant 0 : index
    %c0_10 = arith.constant 0 : index
    %8 = vector.load %arg5[%c0_9, %c0_10] : memref<1x128xf32, #tpu.memory_space<vmem>>, vector<1x128xf32>
    %9 = vector.shape_cast %8 : vector<1x128xf32> to vector<1x128xf32>
    %10 = vector.broadcast %9 : vector<1x128xf32> to vector<8x128xf32>
    %cst_11 = arith.constant 0.000000e+00 : f32
    %11 = vector.broadcast %cst_11 : f32 to vector<8x32xf32>
    %cst_12 = arith.constant 0.000000e+00 : bf16
    %12 = vector.broadcast %cst_12 : bf16 to vector<8x32xbf16>
    %13 = vector.extract_strided_slice %5 {offsets = [0, 0], sizes = [8, 128], strides = [1, 1]} : vector<64x128xf32> to vector<8x128xf32>
    %cst_13 = arith.constant dense<0.000000e+00> : vector<8x128xf32>
    %14 = tpu.matmul %12, %6, %cst_13 {dimension_numbers = #tpu.dot_dimension_numbers<[1], [0], [0], [1], [0, 0, 1, 1], [], []>} : vector<8x32xbf16>, vector<32x128xbf16>, vector<8x128xf32> -> vector<8x128xf32>
    %15 = arith.addf %13, %14 : vector<8x128xf32>
    %16 = math.tanh %15 : vector<8x128xf32>
    %cst_14 = arith.constant 5.000000e-01 : f32
    %17 = vector.broadcast %cst_14 : f32 to vector<8x128xf32>
    %18 = arith.mulf %17, %16 : vector<8x128xf32>
    %cst_15 = arith.constant 5.000000e-01 : f32
    %19 = vector.broadcast %cst_15 : f32 to vector<8x128xf32>
    %20 = arith.addf %18, %19 : vector<8x128xf32>
    %21 = vector.extract_strided_slice %20 {offsets = [0, 0], sizes = [8, 32], strides = [1, 1]} : vector<8x128xf32> to vector<8x32xf32>
    %22 = vector.extract_strided_slice %20 {offsets = [0, 32], sizes = [8, 32], strides = [1, 1]} : vector<8x128xf32> to vector<8x32xf32>
    %23 = vector.extract_strided_slice %16 {offsets = [0, 64], sizes = [8, 32], strides = [1, 1]} : vector<8x128xf32> to vector<8x32xf32>
    %24 = vector.extract_strided_slice %20 {offsets = [0, 96], sizes = [8, 32], strides = [1, 1]} : vector<8x128xf32> to vector<8x32xf32>
    %25 = arith.mulf %22, %11 : vector<8x32xf32>
    %26 = arith.mulf %21, %23 : vector<8x32xf32>
    %27 = arith.addf %25, %26 : vector<8x32xf32>
    %28 = math.tanh %27 : vector<8x32xf32>
    %29 = arith.mulf %24, %28 : vector<8x32xf32>
    %30 = arith.truncf %29 : vector<8x32xf32> to vector<8x32xbf16>
    %31 = tpu.concatenate %30, %12 in 1 : vector<8x32xbf16>, vector<8x32xbf16> -> vector<8x64xbf16>
    %cst_16 = arith.constant dense<0.000000e+00> : vector<8x128xf32>
    %32 = tpu.matmul %31, %7, %cst_16 {dimension_numbers = #tpu.dot_dimension_numbers<[1], [0], [0], [1], [0, 0, 1, 1], [], []>} : vector<8x64xbf16>, vector<64x128xbf16>, vector<8x128xf32> -> vector<8x128xf32>
    %33 = arith.addf %32, %10 : vector<8x128xf32>
    %34 = math.tanh %33 : vector<8x128xf32>
    %cst_17 = arith.constant 5.000000e-01 : f32
    %35 = vector.broadcast %cst_17 : f32 to vector<8x128xf32>
    %36 = arith.mulf %35, %34 : vector<8x128xf32>
    %cst_18 = arith.constant 5.000000e-01 : f32
    %37 = vector.broadcast %cst_18 : f32 to vector<8x128xf32>
    %38 = arith.addf %36, %37 : vector<8x128xf32>
    %39 = vector.extract_strided_slice %38 {offsets = [0, 0], sizes = [8, 32], strides = [1, 1]} : vector<8x128xf32> to vector<8x32xf32>
    %40 = vector.extract_strided_slice %38 {offsets = [0, 32], sizes = [8, 32], strides = [1, 1]} : vector<8x128xf32> to vector<8x32xf32>
    %41 = vector.extract_strided_slice %34 {offsets = [0, 64], sizes = [8, 32], strides = [1, 1]} : vector<8x128xf32> to vector<8x32xf32>
    %42 = vector.extract_strided_slice %38 {offsets = [0, 96], sizes = [8, 32], strides = [1, 1]} : vector<8x128xf32> to vector<8x32xf32>
    %43 = arith.mulf %40, %11 : vector<8x32xf32>
    %44 = arith.mulf %39, %41 : vector<8x32xf32>
    %45 = arith.addf %43, %44 : vector<8x32xf32>
    %46 = math.tanh %45 : vector<8x32xf32>
    %47 = arith.mulf %42, %46 : vector<8x32xf32>
    %48 = arith.truncf %47 : vector<8x32xf32> to vector<8x32xbf16>
    %c0_19 = arith.constant 0 : index
    %c0_20 = arith.constant 0 : index
    %49 = vector.load %arg9[%c0_19, %c0_20] : memref<64x32xf32, #tpu.memory_space<vmem>>, vector<8x32xf32>
    tpu.vector_store %arg9[%c0_19, %c0_20], %47 {strides = array<i32>} : memref<64x32xf32, #tpu.memory_space<vmem>>, vector<8x32xf32>,
    %50 = vector.extract_strided_slice %5 {offsets = [8, 0], sizes = [8, 128], strides = [1, 1]} : vector<64x128xf32> to vector<8x128xf32>
    %cst_21 = arith.constant dense<0.000000e+00> : vector<8x128xf32>
    %51 = tpu.matmul %30, %6, %cst_21 {dimension_numbers = #tpu.dot_dimension_numbers<[1], [0], [0], [1], [0, 0, 1, 1], [], []>} : vector<8x32xbf16>, vector<32x128xbf16>, vector<8x128xf32> -> vector<8x128xf32>
    %52 = arith.addf %50, %51 : vector<8x128xf32>
    %53 = math.tanh %52 : vector<8x128xf32>
    %cst_22 = arith.constant 5.000000e-01 : f32
    %54 = vector.broadcast %cst_22 : f32 to vector<8x128xf32>
    %55 = arith.mulf %54, %53 : vector<8x128xf32>
    %cst_23 = arith.constant 5.000000e-01 : f32
    %56 = vector.broadcast %cst_23 : f32 to vector<8x128xf32>
    %57 = arith.addf %55, %56 : vector<8x128xf32>
    %58 = vector.extract_strided_slice %57 {offsets = [0, 0], sizes = [8, 32], strides = [1, 1]} : vector<8x128xf32> to vector<8x32xf32>
    %59 = vector.extract_strided_slice %57 {offsets = [0, 32], sizes = [8, 32], strides = [1, 1]} : vector<8x128xf32> to vector<8x32xf32>
    %60 = vector.extract_strided_slice %53 {offsets = [0, 64], sizes = [8, 32], strides = [1, 1]} : vector<8x128xf32> to vector<8x32xf32>
    %61 = vector.extract_strided_slice %57 {offsets = [0, 96], sizes = [8, 32], strides = [1, 1]} : vector<8x128xf32> to vector<8x32xf32>
    %62 = arith.mulf %59, %27 : vector<8x32xf32>
    %63 = arith.mulf %58, %60 : vector<8x32xf32>
    %64 = arith.addf %62, %63 : vector<8x32xf32>
    %65 = math.tanh %64 : vector<8x32xf32>
    %66 = arith.mulf %61, %65 : vector<8x32xf32>
    %67 = arith.truncf %66 : vector<8x32xf32> to vector<8x32xbf16>
    %68 = tpu.concatenate %67, %48 in 1 : vector<8x32xbf16>, vector<8x32xbf16> -> vector<8x64xbf16>
    %cst_24 = arith.constant dense<0.000000e+00> : vector<8x128xf32>
    %69 = tpu.matmul %68, %7, %cst_24 {dimension_numbers = #tpu.dot_dimension_numbers<[1], [0], [0], [1], [0, 0, 1, 1], [], []>} : vector<8x64xbf16>, vector<64x128xbf16>, vector<8x128xf32> -> vector<8x128xf32>
    %70 = arith.addf %69, %10 : vector<8x128xf32>
    %71 = math.tanh %70 : vector<8x128xf32>
    %cst_25 = arith.constant 5.000000e-01 : f32
    %72 = vector.broadcast %cst_25 : f32 to vector<8x128xf32>
    %73 = arith.mulf %72, %71 : vector<8x128xf32>
    %cst_26 = arith.constant 5.000000e-01 : f32
    %74 = vector.broadcast %cst_26 : f32 to vector<8x128xf32>
    %75 = arith.addf %73, %74 : vector<8x128xf32>
    %76 = vector.extract_strided_slice %75 {offsets = [0, 0], sizes = [8, 32], strides = [1, 1]} : vector<8x128xf32> to vector<8x32xf32>
    %77 = vector.extract_strided_slice %75 {offsets = [0, 32], sizes = [8, 32], strides = [1, 1]} : vector<8x128xf32> to vector<8x32xf32>
    %78 = vector.extract_strided_slice %71 {offsets = [0, 64], sizes = [8, 32], strides = [1, 1]} : vector<8x128xf32> to vector<8x32xf32>
    %79 = vector.extract_strided_slice %75 {offsets = [0, 96], sizes = [8, 32], strides = [1, 1]} : vector<8x128xf32> to vector<8x32xf32>
    %80 = arith.mulf %77, %45 : vector<8x32xf32>
    %81 = arith.mulf %76, %78 : vector<8x32xf32>
    %82 = arith.addf %80, %81 : vector<8x32xf32>
    %83 = math.tanh %82 : vector<8x32xf32>
    %84 = arith.mulf %79, %83 : vector<8x32xf32>
    %85 = arith.truncf %84 : vector<8x32xf32> to vector<8x32xbf16>
    %c8 = arith.constant 8 : index
    %c0_27 = arith.constant 0 : index
    %86 = vector.load %arg9[%c8, %c0_27] : memref<64x32xf32, #tpu.memory_space<vmem>>, vector<8x32xf32>
    tpu.vector_store %arg9[%c8, %c0_27], %84 {strides = array<i32>} : memref<64x32xf32, #tpu.memory_space<vmem>>, vector<8x32xf32>,
    %87 = vector.extract_strided_slice %5 {offsets = [16, 0], sizes = [8, 128], strides = [1, 1]} : vector<64x128xf32> to vector<8x128xf32>
    %cst_28 = arith.constant dense<0.000000e+00> : vector<8x128xf32>
    %88 = tpu.matmul %67, %6, %cst_28 {dimension_numbers = #tpu.dot_dimension_numbers<[1], [0], [0], [1], [0, 0, 1, 1], [], []>} : vector<8x32xbf16>, vector<32x128xbf16>, vector<8x128xf32> -> vector<8x128xf32>
    %89 = arith.addf %87, %88 : vector<8x128xf32>
    %90 = math.tanh %89 : vector<8x128xf32>
    %cst_29 = arith.constant 5.000000e-01 : f32
    %91 = vector.broadcast %cst_29 : f32 to vector<8x128xf32>
    %92 = arith.mulf %91, %90 : vector<8x128xf32>
    %cst_30 = arith.constant 5.000000e-01 : f32
    %93 = vector.broadcast %cst_30 : f32 to vector<8x128xf32>
    %94 = arith.addf %92, %93 : vector<8x128xf32>
    %95 = vector.extract_strided_slice %94 {offsets = [0, 0], sizes = [8, 32], strides = [1, 1]} : vector<8x128xf32> to vector<8x32xf32>
    %96 = vector.extract_strided_slice %94 {offsets = [0, 32], sizes = [8, 32], strides = [1, 1]} : vector<8x128xf32> to vector<8x32xf32>
    %97 = vector.extract_strided_slice %90 {offsets = [0, 64], sizes = [8, 32], strides = [1, 1]} : vector<8x128xf32> to vector<8x32xf32>
    %98 = vector.extract_strided_slice %94 {offsets = [0, 96], sizes = [8, 32], strides = [1, 1]} : vector<8x128xf32> to vector<8x32xf32>
    %99 = arith.mulf %96, %64 : vector<8x32xf32>
    %100 = arith.mulf %95, %97 : vector<8x32xf32>
    %101 = arith.addf %99, %100 : vector<8x32xf32>
    %102 = math.tanh %101 : vector<8x32xf32>
    %103 = arith.mulf %98, %102 : vector<8x32xf32>
    %104 = arith.truncf %103 : vector<8x32xf32> to vector<8x32xbf16>
    %105 = tpu.concatenate %104, %85 in 1 : vector<8x32xbf16>, vector<8x32xbf16> -> vector<8x64xbf16>
    %cst_31 = arith.constant dense<0.000000e+00> : vector<8x128xf32>
    %106 = tpu.matmul %105, %7, %cst_31 {dimension_numbers = #tpu.dot_dimension_numbers<[1], [0], [0], [1], [0, 0, 1, 1], [], []>} : vector<8x64xbf16>, vector<64x128xbf16>, vector<8x128xf32> -> vector<8x128xf32>
    %107 = arith.addf %106, %10 : vector<8x128xf32>
    %108 = math.tanh %107 : vector<8x128xf32>
    %cst_32 = arith.constant 5.000000e-01 : f32
    %109 = vector.broadcast %cst_32 : f32 to vector<8x128xf32>
    %110 = arith.mulf %109, %108 : vector<8x128xf32>
    %cst_33 = arith.constant 5.000000e-01 : f32
    %111 = vector.broadcast %cst_33 : f32 to vector<8x128xf32>
    %112 = arith.addf %110, %111 : vector<8x128xf32>
    %113 = vector.extract_strided_slice %112 {offsets = [0, 0], sizes = [8, 32], strides = [1, 1]} : vector<8x128xf32> to vector<8x32xf32>
    %114 = vector.extract_strided_slice %112 {offsets = [0, 32], sizes = [8, 32], strides = [1, 1]} : vector<8x128xf32> to vector<8x32xf32>
    %115 = vector.extract_strided_slice %108 {offsets = [0, 64], sizes = [8, 32], strides = [1, 1]} : vector<8x128xf32> to vector<8x32xf32>
    %116 = vector.extract_strided_slice %112 {offsets = [0, 96], sizes = [8, 32], strides = [1, 1]} : vector<8x128xf32> to vector<8x32xf32>
    %117 = arith.mulf %114, %82 : vector<8x32xf32>
    %118 = arith.mulf %113, %115 : vector<8x32xf32>
    %119 = arith.addf %117, %118 : vector<8x32xf32>
    %120 = math.tanh %119 : vector<8x32xf32>
    %121 = arith.mulf %116, %120 : vector<8x32xf32>
    %122 = arith.truncf %121 : vector<8x32xf32> to vector<8x32xbf16>
    %c16 = arith.constant 16 : index
    %c0_34 = arith.constant 0 : index
    %123 = vector.load %arg9[%c16, %c0_34] : memref<64x32xf32, #tpu.memory_space<vmem>>, vector<8x32xf32>
    tpu.vector_store %arg9[%c16, %c0_34], %121 {strides = array<i32>} : memref<64x32xf32, #tpu.memory_space<vmem>>, vector<8x32xf32>,
    %124 = vector.extract_strided_slice %5 {offsets = [24, 0], sizes = [8, 128], strides = [1, 1]} : vector<64x128xf32> to vector<8x128xf32>
    %cst_35 = arith.constant dense<0.000000e+00> : vector<8x128xf32>
    %125 = tpu.matmul %104, %6, %cst_35 {dimension_numbers = #tpu.dot_dimension_numbers<[1], [0], [0], [1], [0, 0, 1, 1], [], []>} : vector<8x32xbf16>, vector<32x128xbf16>, vector<8x128xf32> -> vector<8x128xf32>
    %126 = arith.addf %124, %125 : vector<8x128xf32>
    %127 = math.tanh %126 : vector<8x128xf32>
    %cst_36 = arith.constant 5.000000e-01 : f32
    %128 = vector.broadcast %cst_36 : f32 to vector<8x128xf32>
    %129 = arith.mulf %128, %127 : vector<8x128xf32>
    %cst_37 = arith.constant 5.000000e-01 : f32
    %130 = vector.broadcast %cst_37 : f32 to vector<8x128xf32>
    %131 = arith.addf %129, %130 : vector<8x128xf32>
    %132 = vector.extract_strided_slice %131 {offsets = [0, 0], sizes = [8, 32], strides = [1, 1]} : vector<8x128xf32> to vector<8x32xf32>
    %133 = vector.extract_strided_slice %131 {offsets = [0, 32], sizes = [8, 32], strides = [1, 1]} : vector<8x128xf32> to vector<8x32xf32>
    %134 = vector.extract_strided_slice %127 {offsets = [0, 64], sizes = [8, 32], strides = [1, 1]} : vector<8x128xf32> to vector<8x32xf32>
    %135 = vector.extract_strided_slice %131 {offsets = [0, 96], sizes = [8, 32], strides = [1, 1]} : vector<8x128xf32> to vector<8x32xf32>
    %136 = arith.mulf %133, %101 : vector<8x32xf32>
    %137 = arith.mulf %132, %134 : vector<8x32xf32>
    %138 = arith.addf %136, %137 : vector<8x32xf32>
    %139 = math.tanh %138 : vector<8x32xf32>
    %140 = arith.mulf %135, %139 : vector<8x32xf32>
    %141 = arith.truncf %140 : vector<8x32xf32> to vector<8x32xbf16>
    %142 = tpu.concatenate %141, %122 in 1 : vector<8x32xbf16>, vector<8x32xbf16> -> vector<8x64xbf16>
    %cst_38 = arith.constant dense<0.000000e+00> : vector<8x128xf32>
    %143 = tpu.matmul %142, %7, %cst_38 {dimension_numbers = #tpu.dot_dimension_numbers<[1], [0], [0], [1], [0, 0, 1, 1], [], []>} : vector<8x64xbf16>, vector<64x128xbf16>, vector<8x128xf32> -> vector<8x128xf32>
    %144 = arith.addf %143, %10 : vector<8x128xf32>
    %145 = math.tanh %144 : vector<8x128xf32>
    %cst_39 = arith.constant 5.000000e-01 : f32
    %146 = vector.broadcast %cst_39 : f32 to vector<8x128xf32>
    %147 = arith.mulf %146, %145 : vector<8x128xf32>
    %cst_40 = arith.constant 5.000000e-01 : f32
    %148 = vector.broadcast %cst_40 : f32 to vector<8x128xf32>
    %149 = arith.addf %147, %148 : vector<8x128xf32>
    %150 = vector.extract_strided_slice %149 {offsets = [0, 0], sizes = [8, 32], strides = [1, 1]} : vector<8x128xf32> to vector<8x32xf32>
    %151 = vector.extract_strided_slice %149 {offsets = [0, 32], sizes = [8, 32], strides = [1, 1]} : vector<8x128xf32> to vector<8x32xf32>
    %152 = vector.extract_strided_slice %145 {offsets = [0, 64], sizes = [8, 32], strides = [1, 1]} : vector<8x128xf32> to vector<8x32xf32>
    %153 = vector.extract_strided_slice %149 {offsets = [0, 96], sizes = [8, 32], strides = [1, 1]} : vector<8x128xf32> to vector<8x32xf32>
    %154 = arith.mulf %151, %119 : vector<8x32xf32>
    %155 = arith.mulf %150, %152 : vector<8x32xf32>
    %156 = arith.addf %154, %155 : vector<8x32xf32>
    %157 = math.tanh %156 : vector<8x32xf32>
    %158 = arith.mulf %153, %157 : vector<8x32xf32>
    %159 = arith.truncf %158 : vector<8x32xf32> to vector<8x32xbf16>
    %c24 = arith.constant 24 : index
    %c0_41 = arith.constant 0 : index
    %160 = vector.load %arg9[%c24, %c0_41] : memref<64x32xf32, #tpu.memory_space<vmem>>, vector<8x32xf32>
    tpu.vector_store %arg9[%c24, %c0_41], %158 {strides = array<i32>} : memref<64x32xf32, #tpu.memory_space<vmem>>, vector<8x32xf32>,
    %161 = vector.extract_strided_slice %5 {offsets = [32, 0], sizes = [8, 128], strides = [1, 1]} : vector<64x128xf32> to vector<8x128xf32>
    %cst_42 = arith.constant dense<0.000000e+00> : vector<8x128xf32>
    %162 = tpu.matmul %141, %6, %cst_42 {dimension_numbers = #tpu.dot_dimension_numbers<[1], [0], [0], [1], [0, 0, 1, 1], [], []>} : vector<8x32xbf16>, vector<32x128xbf16>, vector<8x128xf32> -> vector<8x128xf32>
    %163 = arith.addf %161, %162 : vector<8x128xf32>
    %164 = math.tanh %163 : vector<8x128xf32>
    %cst_43 = arith.constant 5.000000e-01 : f32
    %165 = vector.broadcast %cst_43 : f32 to vector<8x128xf32>
    %166 = arith.mulf %165, %164 : vector<8x128xf32>
    %cst_44 = arith.constant 5.000000e-01 : f32
    %167 = vector.broadcast %cst_44 : f32 to vector<8x128xf32>
    %168 = arith.addf %166, %167 : vector<8x128xf32>
    %169 = vector.extract_strided_slice %168 {offsets = [0, 0], sizes = [8, 32], strides = [1, 1]} : vector<8x128xf32> to vector<8x32xf32>
    %170 = vector.extract_strided_slice %168 {offsets = [0, 32], sizes = [8, 32], strides = [1, 1]} : vector<8x128xf32> to vector<8x32xf32>
    %171 = vector.extract_strided_slice %164 {offsets = [0, 64], sizes = [8, 32], strides = [1, 1]} : vector<8x128xf32> to vector<8x32xf32>
    %172 = vector.extract_strided_slice %168 {offsets = [0, 96], sizes = [8, 32], strides = [1, 1]} : vector<8x128xf32> to vector<8x32xf32>
    %173 = arith.mulf %170, %138 : vector<8x32xf32>
    %174 = arith.mulf %169, %171 : vector<8x32xf32>
    %175 = arith.addf %173, %174 : vector<8x32xf32>
    %176 = math.tanh %175 : vector<8x32xf32>
    %177 = arith.mulf %172, %176 : vector<8x32xf32>
    %178 = arith.truncf %177 : vector<8x32xf32> to vector<8x32xbf16>
    %179 = tpu.concatenate %178, %159 in 1 : vector<8x32xbf16>, vector<8x32xbf16> -> vector<8x64xbf16>
    %cst_45 = arith.constant dense<0.000000e+00> : vector<8x128xf32>
    %180 = tpu.matmul %179, %7, %cst_45 {dimension_numbers = #tpu.dot_dimension_numbers<[1], [0], [0], [1], [0, 0, 1, 1], [], []>} : vector<8x64xbf16>, vector<64x128xbf16>, vector<8x128xf32> -> vector<8x128xf32>
    %181 = arith.addf %180, %10 : vector<8x128xf32>
    %182 = math.tanh %181 : vector<8x128xf32>
    %cst_46 = arith.constant 5.000000e-01 : f32
    %183 = vector.broadcast %cst_46 : f32 to vector<8x128xf32>
    %184 = arith.mulf %183, %182 : vector<8x128xf32>
    %cst_47 = arith.constant 5.000000e-01 : f32
    %185 = vector.broadcast %cst_47 : f32 to vector<8x128xf32>
    %186 = arith.addf %184, %185 : vector<8x128xf32>
    %187 = vector.extract_strided_slice %186 {offsets = [0, 0], sizes = [8, 32], strides = [1, 1]} : vector<8x128xf32> to vector<8x32xf32>
    %188 = vector.extract_strided_slice %186 {offsets = [0, 32], sizes = [8, 32], strides = [1, 1]} : vector<8x128xf32> to vector<8x32xf32>
    %189 = vector.extract_strided_slice %182 {offsets = [0, 64], sizes = [8, 32], strides = [1, 1]} : vector<8x128xf32> to vector<8x32xf32>
    %190 = vector.extract_strided_slice %186 {offsets = [0, 96], sizes = [8, 32], strides = [1, 1]} : vector<8x128xf32> to vector<8x32xf32>
    %191 = arith.mulf %188, %156 : vector<8x32xf32>
    %192 = arith.mulf %187, %189 : vector<8x32xf32>
    %193 = arith.addf %191, %192 : vector<8x32xf32>
    %194 = math.tanh %193 : vector<8x32xf32>
    %195 = arith.mulf %190, %194 : vector<8x32xf32>
    %196 = arith.truncf %195 : vector<8x32xf32> to vector<8x32xbf16>
    %c32 = arith.constant 32 : index
    %c0_48 = arith.constant 0 : index
    %197 = vector.load %arg9[%c32, %c0_48] : memref<64x32xf32, #tpu.memory_space<vmem>>, vector<8x32xf32>
    tpu.vector_store %arg9[%c32, %c0_48], %195 {strides = array<i32>} : memref<64x32xf32, #tpu.memory_space<vmem>>, vector<8x32xf32>,
    %198 = vector.extract_strided_slice %5 {offsets = [40, 0], sizes = [8, 128], strides = [1, 1]} : vector<64x128xf32> to vector<8x128xf32>
    %cst_49 = arith.constant dense<0.000000e+00> : vector<8x128xf32>
    %199 = tpu.matmul %178, %6, %cst_49 {dimension_numbers = #tpu.dot_dimension_numbers<[1], [0], [0], [1], [0, 0, 1, 1], [], []>} : vector<8x32xbf16>, vector<32x128xbf16>, vector<8x128xf32> -> vector<8x128xf32>
    %200 = arith.addf %198, %199 : vector<8x128xf32>
    %201 = math.tanh %200 : vector<8x128xf32>
    %cst_50 = arith.constant 5.000000e-01 : f32
    %202 = vector.broadcast %cst_50 : f32 to vector<8x128xf32>
    %203 = arith.mulf %202, %201 : vector<8x128xf32>
    %cst_51 = arith.constant 5.000000e-01 : f32
    %204 = vector.broadcast %cst_51 : f32 to vector<8x128xf32>
    %205 = arith.addf %203, %204 : vector<8x128xf32>
    %206 = vector.extract_strided_slice %205 {offsets = [0, 0], sizes = [8, 32], strides = [1, 1]} : vector<8x128xf32> to vector<8x32xf32>
    %207 = vector.extract_strided_slice %205 {offsets = [0, 32], sizes = [8, 32], strides = [1, 1]} : vector<8x128xf32> to vector<8x32xf32>
    %208 = vector.extract_strided_slice %201 {offsets = [0, 64], sizes = [8, 32], strides = [1, 1]} : vector<8x128xf32> to vector<8x32xf32>
    %209 = vector.extract_strided_slice %205 {offsets = [0, 96], sizes = [8, 32], strides = [1, 1]} : vector<8x128xf32> to vector<8x32xf32>
    %210 = arith.mulf %207, %175 : vector<8x32xf32>
    %211 = arith.mulf %206, %208 : vector<8x32xf32>
    %212 = arith.addf %210, %211 : vector<8x32xf32>
    %213 = math.tanh %212 : vector<8x32xf32>
    %214 = arith.mulf %209, %213 : vector<8x32xf32>
    %215 = arith.truncf %214 : vector<8x32xf32> to vector<8x32xbf16>
    %216 = tpu.concatenate %215, %196 in 1 : vector<8x32xbf16>, vector<8x32xbf16> -> vector<8x64xbf16>
    %cst_52 = arith.constant dense<0.000000e+00> : vector<8x128xf32>
    %217 = tpu.matmul %216, %7, %cst_52 {dimension_numbers = #tpu.dot_dimension_numbers<[1], [0], [0], [1], [0, 0, 1, 1], [], []>} : vector<8x64xbf16>, vector<64x128xbf16>, vector<8x128xf32> -> vector<8x128xf32>
    %218 = arith.addf %217, %10 : vector<8x128xf32>
    %219 = math.tanh %218 : vector<8x128xf32>
    %cst_53 = arith.constant 5.000000e-01 : f32
    %220 = vector.broadcast %cst_53 : f32 to vector<8x128xf32>
    %221 = arith.mulf %220, %219 : vector<8x128xf32>
    %cst_54 = arith.constant 5.000000e-01 : f32
    %222 = vector.broadcast %cst_54 : f32 to vector<8x128xf32>
    %223 = arith.addf %221, %222 : vector<8x128xf32>
    %224 = vector.extract_strided_slice %223 {offsets = [0, 0], sizes = [8, 32], strides = [1, 1]} : vector<8x128xf32> to vector<8x32xf32>
    %225 = vector.extract_strided_slice %223 {offsets = [0, 32], sizes = [8, 32], strides = [1, 1]} : vector<8x128xf32> to vector<8x32xf32>
    %226 = vector.extract_strided_slice %219 {offsets = [0, 64], sizes = [8, 32], strides = [1, 1]} : vector<8x128xf32> to vector<8x32xf32>
    %227 = vector.extract_strided_slice %223 {offsets = [0, 96], sizes = [8, 32], strides = [1, 1]} : vector<8x128xf32> to vector<8x32xf32>
    %228 = arith.mulf %225, %193 : vector<8x32xf32>
    %229 = arith.mulf %224, %226 : vector<8x32xf32>
    %230 = arith.addf %228, %229 : vector<8x32xf32>
    %231 = math.tanh %230 : vector<8x32xf32>
    %232 = arith.mulf %227, %231 : vector<8x32xf32>
    %233 = arith.truncf %232 : vector<8x32xf32> to vector<8x32xbf16>
    %c40 = arith.constant 40 : index
    %c0_55 = arith.constant 0 : index
    %234 = vector.load %arg9[%c40, %c0_55] : memref<64x32xf32, #tpu.memory_space<vmem>>, vector<8x32xf32>
    tpu.vector_store %arg9[%c40, %c0_55], %232 {strides = array<i32>} : memref<64x32xf32, #tpu.memory_space<vmem>>, vector<8x32xf32>,
    %235 = vector.extract_strided_slice %5 {offsets = [48, 0], sizes = [8, 128], strides = [1, 1]} : vector<64x128xf32> to vector<8x128xf32>
    %cst_56 = arith.constant dense<0.000000e+00> : vector<8x128xf32>
    %236 = tpu.matmul %215, %6, %cst_56 {dimension_numbers = #tpu.dot_dimension_numbers<[1], [0], [0], [1], [0, 0, 1, 1], [], []>} : vector<8x32xbf16>, vector<32x128xbf16>, vector<8x128xf32> -> vector<8x128xf32>
    %237 = arith.addf %235, %236 : vector<8x128xf32>
    %238 = math.tanh %237 : vector<8x128xf32>
    %cst_57 = arith.constant 5.000000e-01 : f32
    %239 = vector.broadcast %cst_57 : f32 to vector<8x128xf32>
    %240 = arith.mulf %239, %238 : vector<8x128xf32>
    %cst_58 = arith.constant 5.000000e-01 : f32
    %241 = vector.broadcast %cst_58 : f32 to vector<8x128xf32>
    %242 = arith.addf %240, %241 : vector<8x128xf32>
    %243 = vector.extract_strided_slice %242 {offsets = [0, 0], sizes = [8, 32], strides = [1, 1]} : vector<8x128xf32> to vector<8x32xf32>
    %244 = vector.extract_strided_slice %242 {offsets = [0, 32], sizes = [8, 32], strides = [1, 1]} : vector<8x128xf32> to vector<8x32xf32>
    %245 = vector.extract_strided_slice %238 {offsets = [0, 64], sizes = [8, 32], strides = [1, 1]} : vector<8x128xf32> to vector<8x32xf32>
    %246 = vector.extract_strided_slice %242 {offsets = [0, 96], sizes = [8, 32], strides = [1, 1]} : vector<8x128xf32> to vector<8x32xf32>
    %247 = arith.mulf %244, %212 : vector<8x32xf32>
    %248 = arith.mulf %243, %245 : vector<8x32xf32>
    %249 = arith.addf %247, %248 : vector<8x32xf32>
    %250 = math.tanh %249 : vector<8x32xf32>
    %251 = arith.mulf %246, %250 : vector<8x32xf32>
    %252 = arith.truncf %251 : vector<8x32xf32> to vector<8x32xbf16>
    %253 = tpu.concatenate %252, %233 in 1 : vector<8x32xbf16>, vector<8x32xbf16> -> vector<8x64xbf16>
    %cst_59 = arith.constant dense<0.000000e+00> : vector<8x128xf32>
    %254 = tpu.matmul %253, %7, %cst_59 {dimension_numbers = #tpu.dot_dimension_numbers<[1], [0], [0], [1], [0, 0, 1, 1], [], []>} : vector<8x64xbf16>, vector<64x128xbf16>, vector<8x128xf32> -> vector<8x128xf32>
    %255 = arith.addf %254, %10 : vector<8x128xf32>
    %256 = math.tanh %255 : vector<8x128xf32>
    %cst_60 = arith.constant 5.000000e-01 : f32
    %257 = vector.broadcast %cst_60 : f32 to vector<8x128xf32>
    %258 = arith.mulf %257, %256 : vector<8x128xf32>
    %cst_61 = arith.constant 5.000000e-01 : f32
    %259 = vector.broadcast %cst_61 : f32 to vector<8x128xf32>
    %260 = arith.addf %258, %259 : vector<8x128xf32>
    %261 = vector.extract_strided_slice %260 {offsets = [0, 0], sizes = [8, 32], strides = [1, 1]} : vector<8x128xf32> to vector<8x32xf32>
    %262 = vector.extract_strided_slice %260 {offsets = [0, 32], sizes = [8, 32], strides = [1, 1]} : vector<8x128xf32> to vector<8x32xf32>
    %263 = vector.extract_strided_slice %256 {offsets = [0, 64], sizes = [8, 32], strides = [1, 1]} : vector<8x128xf32> to vector<8x32xf32>
    %264 = vector.extract_strided_slice %260 {offsets = [0, 96], sizes = [8, 32], strides = [1, 1]} : vector<8x128xf32> to vector<8x32xf32>
    %265 = arith.mulf %262, %230 : vector<8x32xf32>
    %266 = arith.mulf %261, %263 : vector<8x32xf32>
    %267 = arith.addf %265, %266 : vector<8x32xf32>
    %268 = math.tanh %267 : vector<8x32xf32>
    %269 = arith.mulf %264, %268 : vector<8x32xf32>
    %270 = arith.truncf %269 : vector<8x32xf32> to vector<8x32xbf16>
    %c48 = arith.constant 48 : index
    %c0_62 = arith.constant 0 : index
    %271 = vector.load %arg9[%c48, %c0_62] : memref<64x32xf32, #tpu.memory_space<vmem>>, vector<8x32xf32>
    tpu.vector_store %arg9[%c48, %c0_62], %269 {strides = array<i32>} : memref<64x32xf32, #tpu.memory_space<vmem>>, vector<8x32xf32>,
    %272 = vector.extract_strided_slice %5 {offsets = [56, 0], sizes = [8, 128], strides = [1, 1]} : vector<64x128xf32> to vector<8x128xf32>
    %cst_63 = arith.constant dense<0.000000e+00> : vector<8x128xf32>
    %273 = tpu.matmul %252, %6, %cst_63 {dimension_numbers = #tpu.dot_dimension_numbers<[1], [0], [0], [1], [0, 0, 1, 1], [], []>} : vector<8x32xbf16>, vector<32x128xbf16>, vector<8x128xf32> -> vector<8x128xf32>
    %274 = arith.addf %272, %273 : vector<8x128xf32>
    %275 = math.tanh %274 : vector<8x128xf32>
    %cst_64 = arith.constant 5.000000e-01 : f32
    %276 = vector.broadcast %cst_64 : f32 to vector<8x128xf32>
    %277 = arith.mulf %276, %275 : vector<8x128xf32>
    %cst_65 = arith.constant 5.000000e-01 : f32
    %278 = vector.broadcast %cst_65 : f32 to vector<8x128xf32>
    %279 = arith.addf %277, %278 : vector<8x128xf32>
    %280 = vector.extract_strided_slice %279 {offsets = [0, 0], sizes = [8, 32], strides = [1, 1]} : vector<8x128xf32> to vector<8x32xf32>
    %281 = vector.extract_strided_slice %279 {offsets = [0, 32], sizes = [8, 32], strides = [1, 1]} : vector<8x128xf32> to vector<8x32xf32>
    %282 = vector.extract_strided_slice %275 {offsets = [0, 64], sizes = [8, 32], strides = [1, 1]} : vector<8x128xf32> to vector<8x32xf32>
    %283 = vector.extract_strided_slice %279 {offsets = [0, 96], sizes = [8, 32], strides = [1, 1]} : vector<8x128xf32> to vector<8x32xf32>
    %284 = arith.mulf %281, %249 : vector<8x32xf32>
    %285 = arith.mulf %280, %282 : vector<8x32xf32>
    %286 = arith.addf %284, %285 : vector<8x32xf32>
    %287 = math.tanh %286 : vector<8x32xf32>
    %288 = arith.mulf %283, %287 : vector<8x32xf32>
    %289 = arith.truncf %288 : vector<8x32xf32> to vector<8x32xbf16>
    %290 = tpu.concatenate %289, %270 in 1 : vector<8x32xbf16>, vector<8x32xbf16> -> vector<8x64xbf16>
    %cst_66 = arith.constant dense<0.000000e+00> : vector<8x128xf32>
    %291 = tpu.matmul %290, %7, %cst_66 {dimension_numbers = #tpu.dot_dimension_numbers<[1], [0], [0], [1], [0, 0, 1, 1], [], []>} : vector<8x64xbf16>, vector<64x128xbf16>, vector<8x128xf32> -> vector<8x128xf32>
    %292 = arith.addf %291, %10 : vector<8x128xf32>
    %293 = math.tanh %292 : vector<8x128xf32>
    %cst_67 = arith.constant 5.000000e-01 : f32
    %294 = vector.broadcast %cst_67 : f32 to vector<8x128xf32>
    %295 = arith.mulf %294, %293 : vector<8x128xf32>
    %cst_68 = arith.constant 5.000000e-01 : f32
    %296 = vector.broadcast %cst_68 : f32 to vector<8x128xf32>
    %297 = arith.addf %295, %296 : vector<8x128xf32>
    %298 = vector.extract_strided_slice %297 {offsets = [0, 0], sizes = [8, 32], strides = [1, 1]} : vector<8x128xf32> to vector<8x32xf32>
    %299 = vector.extract_strided_slice %297 {offsets = [0, 32], sizes = [8, 32], strides = [1, 1]} : vector<8x128xf32> to vector<8x32xf32>
    %300 = vector.extract_strided_slice %293 {offsets = [0, 64], sizes = [8, 32], strides = [1, 1]} : vector<8x128xf32> to vector<8x32xf32>
    %301 = vector.extract_strided_slice %297 {offsets = [0, 96], sizes = [8, 32], strides = [1, 1]} : vector<8x128xf32> to vector<8x32xf32>
    %302 = arith.mulf %299, %267 : vector<8x32xf32>
    %303 = arith.mulf %298, %300 : vector<8x32xf32>
    %304 = arith.addf %302, %303 : vector<8x32xf32>
    %305 = math.tanh %304 : vector<8x32xf32>
    %306 = arith.mulf %301, %305 : vector<8x32xf32>
    %c56 = arith.constant 56 : index
    %c0_69 = arith.constant 0 : index
    %307 = vector.load %arg9[%c56, %c0_69] : memref<64x32xf32, #tpu.memory_space<vmem>>, vector<8x32xf32>
    tpu.vector_store %arg9[%c56, %c0_69], %306 {strides = array<i32>} : memref<64x32xf32, #tpu.memory_space<vmem>>, vector<8x32xf32>,
    %c0_70 = arith.constant 0 : index
    %c0_71 = arith.constant 0 : index
    %308 = vector.load %arg9[%c0_70, %c0_71] : memref<64x32xf32, #tpu.memory_space<vmem>>, vector<64x32xf32>
    %309 = arith.truncf %308 : vector<64x32xf32> to vector<64x32xbf16>
    %c0_72 = arith.constant 0 : index
    %c0_73 = arith.constant 0 : index
    %310 = vector.load %arg6[%c0_72, %c0_73] : memref<32x64xbf16, #tpu.memory_space<vmem>>, vector<32x64xbf16>
    %cst_74 = arith.constant dense<0.000000e+00> : vector<64x64xf32>
    %311 = tpu.matmul %309, %310, %cst_74 {dimension_numbers = #tpu.dot_dimension_numbers<[1], [0], [0], [1], [0, 0, 1, 1], [], []>} : vector<64x32xbf16>, vector<32x64xbf16>, vector<64x64xf32> -> vector<64x64xf32>
    %c0_75 = arith.constant 0 : index
    %c0_76 = arith.constant 0 : index
    %312 = vector.load %arg7[%c0_75, %c0_76] : memref<1x64xf32, #tpu.memory_space<vmem>>, vector<1x64xf32>
    %313 = vector.broadcast %312 : vector<1x64xf32> to vector<64x64xf32>
    %314 = arith.addf %311, %313 : vector<64x64xf32>
    %c0_77 = arith.constant 0 : index
    %c0_78 = arith.constant 0 : index
    %315 = vector.load %arg8[%c0_77, %c0_78] : memref<64x64xf32, #tpu.memory_space<vmem>>, vector<64x64xf32>
    tpu.vector_store %arg8[%c0_77, %c0_78], %314 {strides = array<i32>} : memref<64x64xf32, #tpu.memory_space<vmem>>, vector<64x64xf32>,
    return
  }
}

</mosaic_0001>

<bundles_post_ra>
// kernel: text_generation_forward.1
= control target key start
LH: loop header
LB: loop body
LE: loop exit
PB: predicated region body
PF: predicated region fallthrough
CT: control target
= control target key end

     0   :  { %v1910_v2 = vmov 0.0   ;;  %vm1911_vm0 = vmmov 0   ;;  %vm98_vm1 = vcmask 523264   ;;  %v1912_v8 = vmov 0   ;;  %s2393_s0 = inlined_call_operand.vmem [shape: bf16[64,64], index: 0, kind: input, shape index: {}]   ;;  %s2394_s1 = inlined_call_operand.vmem [shape: bf16[64,128], index: 1, kind: input, shape index: {}]   ;;  %s2395_s2 = inlined_call_operand.vmem [shape: bf16[32,128], index: 2, kind: input, shape index: {}]   ;;  %s2396_s3 = inlined_call_operand.vmem [shape: f32[1,128], index: 3, kind: input, shape index: {}]   ;;  %s2397_s4 = inlined_call_operand.vmem [shape: bf16[64,128], index: 4, kind: input, shape index: {}]   ;;  %s2398_s5 = inlined_call_operand.vmem [shape: f32[1,128], index: 5, kind: input, shape index: {}]   ;;  %s2399_s6 = inlined_call_operand.vmem [shape: bf16[32,64], index: 6, kind: input, shape index: {}]   ;;  %s2400_s7 = inlined_call_operand.vmem [shape: f32[1,64], index: 7, kind: input, shape index: {}]   ;;  %s2401_s8 = inlined_call_operand.hbm [shape: f32[64,64], index: 8, kind: output, shape index: {}]  }
   0x1   :  { %v1808_v0 = vld [vmem:[%s2394_s1 + $0x18] sm:$0xff]   ;;  %v1809_v1 = vld [vmem:[%s2394_s1 + $0x10] sm:$0xff]   ;;  %1628 = vmatprep.subr.bf16.mxu1 %v1910_v2  ;;  %v1973_v3 = vld [vmem:[%s2395_s2 + $0x8] sm:$0xff]   ;;  %1632 = vmatprep.mubr.msk.bf16.mxu1 %vm1911_vm0, %v1910_v2 }
   0x2   :  { %1612 = vmatprep.subr.bf16.mxu0 %v1808_v0  ;;  %v1811_v4 = vld [vmem:[%s2394_s1 + $0x8] sm:$0xff]   ;;  %1629 = vmatpush3.bf16.msra.mxu1 %v1973_v3  ;;  %v1984_v5 = vld [vmem:[%s2395_s2] sm:$0xff]  }
   0x3   :  { %1613 = vmatpush3.bf16.msra.mxu0 %v1808_v0  ;;  %1630 = vmatprep.subr.bf16.mxu1 %v1910_v2  ;;  %v1814_v6 = vld [vmem:[%s2393_s0] sm:$0xff]  }
   0x4   :  { %1614 = vmatprep.subr.bf16.mxu0 %v1809_v1  ;;  %v1813_v7 = vld [vmem:[%s2394_s1] sm:$0xff]   ;;  %1620 = vmatprep.mubr.msk.bf16.mxu0 %vm98_vm1, %v1814_v6 }
   0x6   :  { %1631 = vmatpush3.bf16.msra.mxu1 %v1984_v5 }
   0x7   :  { %1615 = vmatpush3.bf16.msra.mxu0 %v1809_v1  ;;  %1636 = vmatprep.subr.bf16.mxu1 %v1910_v2 }
   0x8   :  { %1616 = vmatprep.subr.bf16.mxu0 %v1811_v4 }
   0x9   :  { %1633 = vmatmul.mubr.bf16.vlgmr.msra.gmra.mxu1 %v1912_v8 }
   0xa   :  { %1644 = vmatprep.mubr.msk.bf16.mxu1 %vm1911_vm0, %v1910_v2 }
   0xb   :  { %1617 = vmatpush3.bf16.msra.mxu0 %v1811_v4 }
   0xc   :  { %1618 = vmatprep.subr.bf16.mxu0 %v1813_v7 }
   0xd   :  { %13 = vsyncpa [#allocation4], 0  ;;  %v1815_v9 = vld [vmem:[%s2393_s0 + $0x8] sm:$0xff]   ;;  %v2012_v15 = vld [vmem:[%s2396_s3] ss:$0 sm:$0xff]  ;;  %s1913_s21 = smov 64  }
   0xe   :  { %s1914_s22 = smov 32   ;;  %v1816_v27 = vld [vmem:[%s2393_s0 + $0x10] sm:$0xff]   ;;  %v2026_v28 = vld [vmem:[%s2397_s4 + $0x18] sm:$0xff]   ;;  %v2046_v31 = vld [vmem:[%s2397_s4 + $0x8] sm:$0xff]   ;;  %vm207_vm2 = vcmask 261120  }
   0xf   :  { %1619 = vmatpush3.bf16.msra.mxu0 %v1813_v7  ;;  %v1818_v29 = vld [vmem:[%s2393_s0 + $0x18] sm:$0xff]   ;;  %1637 = vmatpush3.bf16.msra.mxu1 %v2026_v28  ;;  %v2036_v30 = vld [vmem:[%s2397_s4 + $0x10] sm:$0xff]   ;;  %v2054_v33 = vld [vmem:[%s2397_s4] sm:$0xff]  }
  0x10   :  { %1648 = vmatprep.subr.bf16.mxu0 %v1910_v2  ;;  %1638 = vmatprep.subr.bf16.mxu1 %v1910_v2  ;;  %v2093_v46 = vld [vmem:[%s2398_s5] ss:$0 sm:$0xff] }
  0x12   :  { %1621 = vmatmul.mubr.msk.bf16.vlgmr.msra.gmra.mxu0 %vm98_vm1, %v1815_v9 }
  0x13   :  { %1649 = vmatpush3.bf16.msra.mxu0 %v1973_v3  ;;  %1624 = vmatprep.mubr.msk.bf16.mxu0 %vm98_vm1, %v1816_v27 }
  0x14   :  { %1650 = vmatprep.subr.bf16.mxu0 %v1910_v2  ;;  %1639 = vmatpush3.bf16.msra.mxu1 %v2036_v30 }
  0x15   :  { %1640 = vmatprep.subr.bf16.mxu1 %v1910_v2 }
  0x17   :  { %1651 = vmatpush3.bf16.msra.mxu0 %v1984_v5 }
  0x18   :  { %1668 = vmatprep.subr.bf16.mxu0 %v1910_v2  ;;  %1641 = vmatpush3.bf16.msra.mxu1 %v2046_v31 }
  0x19   :  { %1642 = vmatprep.subr.bf16.mxu1 %v1910_v2 }
  0x1a   :  { %1625 = vmatmul.mubr.msk.bf16.gmra.mxu0 %vm98_vm1, %v1818_v29 }
  0x1b   :  { %1652 = vmatprep.mubr.msk.bf16.mxu0 %vm1911_vm0, %v1910_v2 }
  0x1c   :  { %1643 = vmatpush3.bf16.msra.mxu1 %v2054_v33 }
  0x1d   :  { %1656 = vmatprep.subr.bf16.mxu1 %v1910_v2 }
  0xc9   :  { %v245_v10 = vpop.f32.mrf.mxu1 }
  0xcb   :  { %v1634_v11 = vpop.f32.mrf.mxu1 }
  0xcd   :  { %v248_v12 = vpop.f32.mrf.mxu1 }
  0xcf   :  { %v1635_v13 = vpop.f32.mrf.mxu1 }
  0xd2   :  { %v2007_v14 = vpop.f32.mrf.mxu0 }
  0xd4   :  { %v145_v16 = vpop.f32.mrf.mxu0 }
  0xd5   :  { %v146_v17 = vadd.f32 %v2012_v15, %v145_v16 }
  0xd6   :  { %v2079_v39 = vpop.f32.mrf.mxu0 }
  0xd7   :  { %v251_v18 = vadd.f32 %v245_v10, %v146_v17 }
  0xd8   :  { %v148_v40 = vpop.f32.mrf.mxu0 }
  0xd9   :  { %1824 = vtanh.f32 %v251_v18  ;;  %v149_v45 = vadd.f32 %v2012_v15, %v148_v40 }
  0xda   :  { %v2081_v41 = vpop.f32.mrf.mxu0 }
  0xdc   :  { %v2083_v42 = vpop.f32.mrf.mxu0 }
  0xde   :  { %v2085_v43 = vpop.f32.mrf.mxu0 }
  0xe0   :  { %v2087_v44 = vpop.f32.mrf.mxu0 }
  0xe6   :  { %v1825_v19 = vpop.eup %1824 }
  0xe7   :  { %257 = vrot.lane.b32.xlu0 %v1825_v19, %s1913_s21  ;;  %v253_v20 = vmul.f32 0.5, %v1825_v19 }
  0xe9   :  { %v254_v21 = vadd.f32 0.5, %v253_v20 }
  0xeb   :  { %v255_v24 = vmul.f32 0.0, %v254_v21 }
 0x159   :  { %v258_v22 = vpop.permute.xlu0 %257 }
 0x15a   :  { %v260_v23 = vmul.f32 %v258_v22, %v254_v21 }
 0x15c   :  { %262 = vrot.lane.b32.xlu0 %v260_v23, %s1914_s22 }
 0x1ce   :  { %v263_v25 = vpop.permute.xlu0 %262 }
 0x1cf   :  { %v2017_v26 = vadd.f32 %v263_v25, %v255_v24  ;;  %v154_v25 = vadd.f32 %v2007_v14, %v2012_v15 }
 0x1d1   :  { %1826 = vtanh.f32 %v2017_v26 }
 0x1de   :  { %v1827_v32 = vpop.eup %1826 }
 0x1df   :  { %268 = vrot.lane.b32.xlu1 %v1827_v32, %s1913_s21 }
 0x251   :  { %v269_v34 = vpop.permute.xlu1 %268 }
 0x252   :  { %v271_v35 = vmul.f32 %v269_v34, %v254_v21 }
 0x254   :  { %v272_v36 = vpack.c.bf16 %v271_v35, %v271_v35 }
 0x256   :  { %274 = vrot.lane.b32.xlu1 %v272_v36, %s1914_s22 }
 0x2c8   :  { %v275_v37 = vpop.permute.xlu1 %274 }
 0x2c9   :  { %v277_v38 = vsel %vm207_vm2, %v275_v37, 0  ;;  %1653 = vmatmul.mubr.msk.bf16.vlgmr.msra.gmra.mxu0 %vm207_vm2, %v275_v37 }
 0x2ca   :  { %1645 = vmatmul.mubr.msk.bf16.vlgmr.msra.gmra.mxu1 %vm98_vm1, %v277_v38  ;;  %1669 = vmatpush3.bf16.msra.mxu0 %v1973_v3 }
 0x2cb   :  { %1657 = vmatpush3.bf16.msra.mxu1 %v2026_v28  ;;  %1670 = vmatprep.subr.bf16.mxu0 %v1910_v2 }
 0x2cc   :  { %1658 = vmatprep.subr.bf16.mxu1 %v1910_v2  ;;  %1672 = vmatprep.mubr.msk.bf16.mxu0 %vm1911_vm0, %v1910_v2 }
 0x2cd   :  { %1664 = vmatprep.mubr.msk.bf16.mxu1 %vm1911_vm0, %v1910_v2 }
 0x2ce   :  { %1671 = vmatpush3.bf16.msra.mxu0 %v1984_v5 }
 0x2cf   :  { %1659 = vmatpush3.bf16.msra.mxu1 %v2036_v30  ;;  %1676 = vmatprep.subr.bf16.mxu0 %v1910_v2 }
 0x2d0   :  { %1660 = vmatprep.subr.bf16.mxu1 %v1910_v2 }
 0x2d3   :  { %1661 = vmatpush3.bf16.msra.mxu1 %v2046_v31 }
 0x2d4   :  { %1662 = vmatprep.subr.bf16.mxu1 %v1910_v2 }
 0x2d7   :  { %1663 = vmatpush3.bf16.msra.mxu1 %v2054_v33 }
 0x2d8   :  { %1688 = vmatprep.subr.bf16.mxu1 %v1910_v2 }
 0x389   :  { %v406_v47 = vpop.f32.mrf.mxu0 }
 0x38a   :  { %v412_v48 = vadd.f32 %v406_v47, %v149_v45  ;;  %v338_v49 = vpop.f32.mrf.mxu1 }
 0x38b   :  { %v339_v50 = vadd.f32 %v2093_v46, %v338_v49  ;;  %v1654_v51 = vpop.f32.mrf.mxu0 }
 0x38c   :  { %1828 = vtanh.f32 %v412_v48  ;;  %v1646_v52 = vpop.f32.mrf.mxu1 }
 0x38d   :  { %1830 = vtanh.f32 %v339_v50  ;;  %v409_v53 = vpop.f32.mrf.mxu0 }
 0x38e   :  { %v341_v54 = vpop.f32.mrf.mxu1 }
 0x38f   :  { %v1655_v55 = vpop.f32.mrf.mxu0 }
 0x390   :  { %v1647_v56 = vpop.f32.mrf.mxu1 }
 0x399   :  { %v1829_v57 = vpop.eup %1828 }
 0x39a   :  { %v1831_v58 = vpop.eup %1830  ;;  %418 = vrot.lane.b32.xlu1 %v1829_v57, %s1913_s21  ;;  %v414_v59 = vmul.f32 0.5, %v1829_v57 }
 0x39b   :  { %349 = vrot.lane.b32.xlu0 %v1831_v58, %s1913_s21  ;;  %v345_v60 = vmul.f32 0.5, %v1831_v58 }
 0x39c   :  { %v415_v61 = vadd.f32 0.5, %v414_v59 }
 0x39d   :  { %v346_v63 = vadd.f32 0.5, %v345_v60 }
 0x39e   :  { %v416_v6 = vmul.f32 %v415_v61, %v2017_v26 }
 0x39f   :  { %v347_v8 = vmul.f32 0.0, %v346_v63 }
 0x40c   :  { %v419_v62 = vpop.permute.xlu1 %418 }
 0x40d   :  { %v421_v0 = vmul.f32 %v419_v62, %v415_v61  ;;  %v350_v1 = vpop.permute.xlu0 %349 }
 0x40e   :  { %v352_v4 = vmul.f32 %v350_v1, %v346_v63 }
 0x40f   :  { %423 = vrot.lane.b32.xlu1 %v421_v0, %s1914_s22 }
 0x410   :  { %354 = vrot.lane.b32.xlu0 %v352_v4, %s1914_s22 }
 0x481   :  { %v424_v7 = vpop.permute.xlu1 %423 }
 0x482   :  { %v2101_v9 = vadd.f32 %v424_v7, %v416_v6  ;;  %v355_v10 = vpop.permute.xlu0 %354 }
 0x483   :  { %v2103_v11 = vadd.f32 %v355_v10, %v347_v8 }
 0x484   :  { %1832 = vtanh.f32 %v2101_v9 }
 0x485   :  { %1834 = vtanh.f32 %v2103_v11 }
 0x491   :  { %v1833_v12 = vpop.eup %1832 }
 0x492   :  { %v1835_v13 = vpop.eup %1834  ;;  %429 = vrot.lane.b32.xlu1 %v1833_v12, %s1913_s21 }
 0x493   :  { %360 = vrot.lane.b32.xlu0 %v1835_v13, %s1913_s21 }
 0x504   :  { %v430_v16 = vpop.permute.xlu1 %429 }
 0x505   :  { %v432_v17 = vmul.f32 %v430_v16, %v415_v61  ;;  %v361_v18 = vpop.permute.xlu0 %360 }
 0x506   :  { %v2109_v19 = vmul.f32 %v361_v18, %v346_v63 }
 0x507   :  { %v433_v20 = vpack.c.bf16 %v432_v17, %v432_v17 }
 0x508   :  { %v364_v21 = vpack.c.bf16 %v2109_v19, %v2109_v19 }
 0x509   :  { %435 = vrot.lane.b32.xlu0 %v433_v20, %s1914_s22 }
 0x50a   :  { %438 = vrot.lane.b32.xlu1 %v364_v21, %s1913_s21 }
 0x57b   :  { %v436_v22 = vpop.permute.xlu0 %435 }
 0x57c   :  { %v439_v23 = vpop.permute.xlu1 %438  ;;  %1673 = vmatmul.mubr.msk.bf16.vlgmr.msra.gmra.mxu0 %vm207_vm2, %v436_v22 }
 0x57d   :  { %v442_v24 = vsel %vm207_vm2, %v436_v22, %v439_v23  ;;  %1677 = vmatpush3.bf16.msra.mxu0 %v2026_v28  ;;  %1684 = vmatprep.mubr.msk.bf16.mxu0 %vm1911_vm0, %v1910_v2 }
 0x57e   :  { %1665 = vmatmul.mubr.msk.bf16.vlgmr.msra.gmra.mxu1 %vm98_vm1, %v442_v24  ;;  %1678 = vmatprep.subr.bf16.mxu0 %v1910_v2 }
 0x57f   :  { %1689 = vmatpush3.bf16.msra.mxu1 %v1973_v3  ;;  %1692 = vmatprep.mubr.msk.bf16.mxu1 %vm1911_vm0, %v1910_v2 }
 0x580   :  { %1690 = vmatprep.subr.bf16.mxu1 %v1910_v2 }
 0x581   :  { %1679 = vmatpush3.bf16.msra.mxu0 %v2036_v30 }
 0x582   :  { %1680 = vmatprep.subr.bf16.mxu0 %v1910_v2 }
 0x583   :  { %1691 = vmatpush3.bf16.msra.mxu1 %v1984_v5 }
 0x584   :  { %1696 = vmatprep.subr.bf16.mxu1 %v1910_v2 }
 0x585   :  { %1681 = vmatpush3.bf16.msra.mxu0 %v2046_v31 }
 0x586   :  { %1682 = vmatprep.subr.bf16.mxu0 %v1910_v2 }
 0x589   :  { %1683 = vmatpush3.bf16.msra.mxu0 %v2054_v33 }
 0x58a   :  { %1708 = vmatprep.subr.bf16.mxu0 %v1910_v2 }
 0x63c   :  { %v547_v26 = vpop.f32.mrf.mxu0 }
 0x63d   :  { %v553_v27 = vadd.f32 %v547_v26, %v154_v25 }
 0x63e   :  { %v479_v29 = vpop.f32.mrf.mxu1  ;;  %v1674_v32 = vpop.f32.mrf.mxu0 }
 0x63f   :  { %1836 = vtanh.f32 %v553_v27  ;;  %v480_v34 = vadd.f32 %v2093_v46, %v479_v29 }
 0x640   :  { %v1666_v35 = vpop.f32.mrf.mxu1  ;;  %v550_v36 = vpop.f32.mrf.mxu0 }
 0x641   :  { %1838 = vtanh.f32 %v480_v34 }
 0x642   :  { %v482_v37 = vpop.f32.mrf.mxu1  ;;  %v1675_v38 = vpop.f32.mrf.mxu0 }
 0x644   :  { %v1667_v40 = vpop.f32.mrf.mxu1 }
 0x64c   :  { %v1837_v45 = vpop.eup %1836 }
 0x64d   :  { %559 = vrot.lane.b32.xlu1 %v1837_v45, %s1913_s21  ;;  %v555_v14 = vmul.f32 0.5, %v1837_v45 }
 0x64e   :  { %v1839_v47 = vpop.eup %1838 }
 0x64f   :  { %490 = vrot.lane.b32.xlu0 %v1839_v47, %s1913_s21  ;;  %v486_v48 = vmul.f32 0.5, %v1839_v47  ;;  %v556_v49 = vadd.f32 0.5, %v555_v14 }
 0x651   :  { %v487_v52 = vadd.f32 0.5, %v486_v48  ;;  %v557_v55 = vmul.f32 %v556_v49, %v2101_v9 }
 0x653   :  { %v488_v58 = vmul.f32 %v487_v52, %v2103_v11  ;;  %v157_v11 = vadd.f32 %v2079_v39, %v2012_v15 }
 0x6bf   :  { %v560_v50 = vpop.permute.xlu1 %559 }
 0x6c0   :  { %v562_v51 = vmul.f32 %v560_v50, %v556_v49 }
 0x6c1   :  { %v491_v53 = vpop.permute.xlu0 %490 }
 0x6c2   :  { %v493_v54 = vmul.f32 %v491_v53, %v487_v52  ;;  %564 = vrot.lane.b32.xlu1 %v562_v51, %s1914_s22 }
 0x6c4   :  { %495 = vrot.lane.b32.xlu0 %v493_v54, %s1914_s22 }
 0x734   :  { %v565_v56 = vpop.permute.xlu1 %564 }
 0x735   :  { %v2142_v57 = vadd.f32 %v565_v56, %v557_v55 }
 0x736   :  { %v496_v59 = vpop.permute.xlu0 %495 }
 0x737   :  { %1840 = vtanh.f32 %v2142_v57  ;;  %v2146_v60 = vadd.f32 %v496_v59, %v488_v58 }
 0x739   :  { %1842 = vtanh.f32 %v2146_v60 }
 0x744   :  { %v1841_v61 = vpop.eup %1840 }
 0x745   :  { %570 = vrot.lane.b32.xlu1 %v1841_v61, %s1913_s21 }
 0x746   :  { %v1843_v62 = vpop.eup %1842 }
 0x747   :  { %501 = vrot.lane.b32.xlu0 %v1843_v62, %s1913_s21 }
 0x7b7   :  { %v571_v63 = vpop.permute.xlu1 %570 }
 0x7b8   :  { %v573_v0 = vmul.f32 %v571_v63, %v556_v49 }
 0x7b9   :  { %v502_v1 = vpop.permute.xlu0 %501 }
 0x7ba   :  { %v574_v4 = vpack.c.bf16 %v573_v0, %v573_v0  ;;  %v2151_v6 = vmul.f32 %v502_v1, %v487_v52 }
 0x7bc   :  { %v505_v7 = vpack.c.bf16 %v2151_v6, %v2151_v6  ;;  %576 = vrot.lane.b32.xlu0 %v574_v4, %s1914_s22 }
 0x7be   :  { %579 = vrot.lane.b32.xlu1 %v505_v7, %s1913_s21 }
 0x82e   :  { %v577_v8 = vpop.permute.xlu0 %576 }
 0x82f   :  { %1693 = vmatmul.mubr.msk.bf16.vlgmr.msra.gmra.mxu1 %vm207_vm2, %v577_v8 }
 0x830   :  { %v580_v9 = vpop.permute.xlu1 %579  ;;  %1697 = vmatpush3.bf16.msra.mxu1 %v2026_v28  ;;  %1704 = vmatprep.mubr.msk.bf16.mxu1 %vm1911_vm0, %v1910_v2 }
 0x831   :  { %v583_v10 = vsel %vm207_vm2, %v577_v8, %v580_v9  ;;  %1698 = vmatprep.subr.bf16.mxu1 %v1910_v2 }
 0x832   :  { %1685 = vmatmul.mubr.msk.bf16.vlgmr.msra.gmra.mxu0 %vm98_vm1, %v583_v10 }
 0x833   :  { %1709 = vmatpush3.bf16.msra.mxu0 %v1973_v3  ;;  %1712 = vmatprep.mubr.msk.bf16.mxu0 %vm1911_vm0, %v1910_v2 }
 0x834   :  { %1699 = vmatpush3.bf16.msra.mxu1 %v2036_v30  ;;  %1710 = vmatprep.subr.bf16.mxu0 %v1910_v2 }
 0x835   :  { %1700 = vmatprep.subr.bf16.mxu1 %v1910_v2 }
 0x837   :  { %1711 = vmatpush3.bf16.msra.mxu0 %v1984_v5 }
 0x838   :  { %1701 = vmatpush3.bf16.msra.mxu1 %v2046_v31  ;;  %1716 = vmatprep.subr.bf16.mxu0 %v1910_v2 }
 0x839   :  { %1702 = vmatprep.subr.bf16.mxu1 %v1910_v2 }
 0x83c   :  { %1703 = vmatpush3.bf16.msra.mxu1 %v2054_v33 }
 0x83d   :  { %1728 = vmatprep.subr.bf16.mxu1 %v1910_v2 }
 0x8ef   :  { %v688_v12 = vpop.f32.mrf.mxu1 }
 0x8f0   :  { %v694_v13 = vadd.f32 %v688_v12, %v157_v11 }
 0x8f1   :  { %v1694_v16 = vpop.f32.mrf.mxu1 }
 0x8f2   :  { %1844 = vtanh.f32 %v694_v13  ;;  %v620_v17 = vpop.f32.mrf.mxu0 }
 0x8f3   :  { %v621_v18 = vadd.f32 %v2093_v46, %v620_v17  ;;  %v691_v20 = vpop.f32.mrf.mxu1 }
 0x8f4   :  { %v1686_v21 = vpop.f32.mrf.mxu0 }
 0x8f5   :  { %1846 = vtanh.f32 %v621_v18  ;;  %v1695_v22 = vpop.f32.mrf.mxu1 }
 0x8f6   :  { %v623_v23 = vpop.f32.mrf.mxu0 }
 0x8f8   :  { %v1687_v24 = vpop.f32.mrf.mxu0 }
 0x8ff   :  { %v1845_v25 = vpop.eup %1844 }
 0x900   :  { %700 = vrot.lane.b32.xlu1 %v1845_v25, %s1913_s21  ;;  %v696_v39 = vmul.f32 0.5, %v1845_v25 }
 0x902   :  { %v1847_v26 = vpop.eup %1846  ;;  %v697_v29 = vadd.f32 0.5, %v696_v39 }
 0x903   :  { %631 = vrot.lane.b32.xlu0 %v1847_v26, %s1913_s21  ;;  %v627_v27 = vmul.f32 0.5, %v1847_v26 }
 0x904   :  { %v698_v38 = vmul.f32 %v697_v29, %v2142_v57 }
 0x905   :  { %v628_v35 = vadd.f32 0.5, %v627_v27 }
 0x907   :  { %v629_v47 = vmul.f32 %v628_v35, %v2146_v60  ;;  %v162_v60 = vadd.f32 %v2012_v15, %v2083_v42 }
 0x972   :  { %v701_v32 = vpop.permute.xlu1 %700 }
 0x973   :  { %v703_v34 = vmul.f32 %v701_v32, %v697_v29 }
 0x975   :  { %v632_v36 = vpop.permute.xlu0 %631  ;;  %705 = vrot.lane.b32.xlu1 %v703_v34, %s1914_s22 }
 0x976   :  { %v634_v37 = vmul.f32 %v632_v36, %v628_v35 }
 0x978   :  { %636 = vrot.lane.b32.xlu0 %v634_v37, %s1914_s22 }
 0x9e7   :  { %v706_v40 = vpop.permute.xlu1 %705 }
 0x9e8   :  { %v2184_v45 = vadd.f32 %v706_v40, %v698_v38 }
 0x9ea   :  { %1848 = vtanh.f32 %v2184_v45  ;;  %v637_v14 = vpop.permute.xlu0 %636 }
 0x9eb   :  { %v2188_v48 = vadd.f32 %v637_v14, %v629_v47 }
 0x9ed   :  { %1850 = vtanh.f32 %v2188_v48 }
 0x9f7   :  { %v1849_v49 = vpop.eup %1848 }
 0x9f8   :  { %711 = vrot.lane.b32.xlu1 %v1849_v49, %s1913_s21 }
 0x9fa   :  { %v1851_v50 = vpop.eup %1850 }
 0x9fb   :  { %642 = vrot.lane.b32.xlu0 %v1851_v50, %s1913_s21 }
 0xa6a   :  { %v712_v51 = vpop.permute.xlu1 %711 }
 0xa6b   :  { %v714_v52 = vmul.f32 %v712_v51, %v697_v29 }
 0xa6d   :  { %v715_v53 = vpack.c.bf16 %v714_v52, %v714_v52  ;;  %v643_v54 = vpop.permute.xlu0 %642 }
 0xa6e   :  { %v2193_v55 = vmul.f32 %v643_v54, %v628_v35 }
 0xa6f   :  { %717 = vrot.lane.b32.xlu0 %v715_v53, %s1914_s22 }
 0xa70   :  { %v646_v56 = vpack.c.bf16 %v2193_v55, %v2193_v55 }
 0xa72   :  { %720 = vrot.lane.b32.xlu1 %v646_v56, %s1913_s21 }
 0xae1   :  { %v718_v57 = vpop.permute.xlu0 %717 }
 0xae2   :  { %1713 = vmatmul.mubr.msk.bf16.vlgmr.msra.gmra.mxu0 %vm207_vm2, %v718_v57 }
 0xae3   :  { %1717 = vmatpush3.bf16.msra.mxu0 %v2026_v28  ;;  %1724 = vmatprep.mubr.msk.bf16.mxu0 %vm1911_vm0, %v1910_v2 }
 0xae4   :  { %v721_v58 = vpop.permute.xlu1 %720  ;;  %1718 = vmatprep.subr.bf16.mxu0 %v1910_v2 }
 0xae5   :  { %v724_v59 = vsel %vm207_vm2, %v718_v57, %v721_v58 }
 0xae6   :  { %1705 = vmatmul.mubr.msk.bf16.vlgmr.msra.gmra.mxu1 %vm98_vm1, %v724_v59 }
 0xae7   :  { %1729 = vmatpush3.bf16.msra.mxu1 %v1973_v3  ;;  %1719 = vmatpush3.bf16.msra.mxu0 %v2036_v30 }
 0xae8   :  { %1730 = vmatprep.subr.bf16.mxu1 %v1910_v2  ;;  %1720 = vmatprep.subr.bf16.mxu0 %v1910_v2 }
 0xae9   :  { %1732 = vmatprep.mubr.msk.bf16.mxu1 %vm1911_vm0, %v1910_v2 }
 0xaeb   :  { %1731 = vmatpush3.bf16.msra.mxu1 %v1984_v5  ;;  %1721 = vmatpush3.bf16.msra.mxu0 %v2046_v31 }
 0xaec   :  { %1722 = vmatprep.subr.bf16.mxu0 %v1910_v2  ;;  %1736 = vmatprep.subr.bf16.mxu1 %v1910_v2 }
 0xaef   :  { %1723 = vmatpush3.bf16.msra.mxu0 %v2054_v33 }
 0xaf0   :  { %1748 = vmatprep.subr.bf16.mxu0 %v1910_v2 }
 0xba2   :  { %v829_v61 = vpop.f32.mrf.mxu0 }
 0xba3   :  { %v835_v62 = vadd.f32 %v829_v61, %v162_v60 }
 0xba4   :  { %v1714_v63 = vpop.f32.mrf.mxu0 }
 0xba5   :  { %1852 = vtanh.f32 %v835_v62 }
 0xba6   :  { %v761_v0 = vpop.f32.mrf.mxu1  ;;  %v832_v1 = vpop.f32.mrf.mxu0 }
 0xba7   :  { %v762_v4 = vadd.f32 %v2093_v46, %v761_v0 }
 0xba8   :  { %v1706_v7 = vpop.f32.mrf.mxu1  ;;  %v1715_v8 = vpop.f32.mrf.mxu0 }
 0xba9   :  { %1854 = vtanh.f32 %v762_v4 }
 0xbaa   :  { %v764_v9 = vpop.f32.mrf.mxu1 }
 0xbac   :  { %v1707_v10 = vpop.f32.mrf.mxu1 }
 0xbb2   :  { %v1853_v11 = vpop.eup %1852 }
 0xbb3   :  { %841 = vrot.lane.b32.xlu1 %v1853_v11, %s1913_s21  ;;  %v837_v42 = vmul.f32 0.5, %v1853_v11 }
 0xbb5   :  { %v838_v13 = vadd.f32 0.5, %v837_v42 }
 0xbb6   :  { %v1855_v12 = vpop.eup %1854 }
 0xbb7   :  { %772 = vrot.lane.b32.xlu0 %v1855_v12, %s1913_s21  ;;  %v768_v16 = vmul.f32 0.5, %v1855_v12  ;;  %v839_v23 = vmul.f32 %v838_v13, %v2184_v45 }
 0xbb9   :  { %v769_v20 = vadd.f32 0.5, %v768_v16 }
 0xbbb   :  { %v770_v26 = vmul.f32 %v769_v20, %v2188_v48  ;;  %v165_v48 = vadd.f32 %v2012_v15, %v2087_v44 }
 0xc25   :  { %v842_v17 = vpop.permute.xlu1 %841 }
 0xc26   :  { %v844_v18 = vmul.f32 %v842_v17, %v838_v13 }
 0xc28   :  { %846 = vrot.lane.b32.xlu1 %v844_v18, %s1914_s22 }
 0xc29   :  { %v773_v21 = vpop.permute.xlu0 %772 }
 0xc2a   :  { %v775_v22 = vmul.f32 %v773_v21, %v769_v20 }
 0xc2c   :  { %777 = vrot.lane.b32.xlu0 %v775_v22, %s1914_s22 }
 0xc9a   :  { %v847_v24 = vpop.permute.xlu1 %846 }
 0xc9b   :  { %v2226_v25 = vadd.f32 %v847_v24, %v839_v23 }
 0xc9d   :  { %1856 = vtanh.f32 %v2226_v25 }
 0xc9e   :  { %v778_v39 = vpop.permute.xlu0 %777 }
 0xc9f   :  { %v2230_v27 = vadd.f32 %v778_v39, %v770_v26 }
 0xca1   :  { %1858 = vtanh.f32 %v2230_v27 }
 0xcaa   :  { %v1857_v29 = vpop.eup %1856 }
 0xcab   :  { %852 = vrot.lane.b32.xlu1 %v1857_v29, %s1913_s21 }
 0xcae   :  { %v1859_v32 = vpop.eup %1858 }
 0xcaf   :  { %783 = vrot.lane.b32.xlu0 %v1859_v32, %s1913_s21 }
 0xd1d   :  { %v853_v34 = vpop.permute.xlu1 %852 }
 0xd1e   :  { %v855_v35 = vmul.f32 %v853_v34, %v838_v13 }
 0xd20   :  { %v856_v36 = vpack.c.bf16 %v855_v35, %v855_v35 }
 0xd21   :  { %v784_v37 = vpop.permute.xlu0 %783 }
 0xd22   :  { %v2235_v38 = vmul.f32 %v784_v37, %v769_v20  ;;  %858 = vrot.lane.b32.xlu0 %v856_v36, %s1914_s22 }
 0xd24   :  { %v787_v40 = vpack.c.bf16 %v2235_v38, %v2235_v38 }
 0xd26   :  { %861 = vrot.lane.b32.xlu1 %v787_v40, %s1913_s21 }
 0xd94   :  { %v859_v45 = vpop.permute.xlu0 %858 }
 0xd95   :  { %1733 = vmatmul.mubr.msk.bf16.vlgmr.msra.gmra.mxu1 %vm207_vm2, %v859_v45 }
 0xd96   :  { %1737 = vmatpush3.bf16.msra.mxu1 %v2026_v28  ;;  %1744 = vmatprep.mubr.msk.bf16.mxu1 %vm1911_vm0, %v1910_v2 }
 0xd97   :  { %1738 = vmatprep.subr.bf16.mxu1 %v1910_v2 }
 0xd98   :  { %v862_v47 = vpop.permute.xlu1 %861 }
 0xd99   :  { %v865_v14 = vsel %vm207_vm2, %v859_v45, %v862_v47 }
 0xd9a   :  { %1725 = vmatmul.mubr.msk.bf16.vlgmr.msra.gmra.mxu0 %vm98_vm1, %v865_v14  ;;  %1739 = vmatpush3.bf16.msra.mxu1 %v2036_v30 }
 0xd9b   :  { %1749 = vmatpush3.bf16.msra.mxu0 %v1973_v3  ;;  %1740 = vmatprep.subr.bf16.mxu1 %v1910_v2 }
 0xd9c   :  { %1750 = vmatprep.subr.bf16.mxu0 %v1910_v2  ;;  %1752 = vmatprep.mubr.msk.bf16.mxu0 %vm1911_vm0, %v1910_v2 }
 0xd9e   :  { %1741 = vmatpush3.bf16.msra.mxu1 %v2046_v31 }
 0xd9f   :  { %1751 = vmatpush3.bf16.msra.mxu0 %v1984_v5  ;;  %1742 = vmatprep.subr.bf16.mxu1 %v1910_v2 }
 0xda0   :  { %1756 = vmatprep.subr.bf16.mxu0 %v1910_v2 }
 0xda2   :  { %1743 = vmatpush3.bf16.msra.mxu1 %v2054_v33 }
 0xda3   :  { %1768 = vmatprep.subr.bf16.mxu1 %v1910_v2 }
 0xe55   :  { %v970_v49 = vpop.f32.mrf.mxu1 }
 0xe56   :  { %v976_v50 = vadd.f32 %v970_v49, %v165_v48 }
 0xe57   :  { %v1734_v51 = vpop.f32.mrf.mxu1 }
 0xe58   :  { %1860 = vtanh.f32 %v976_v50 }
 0xe59   :  { %v973_v52 = vpop.f32.mrf.mxu1 }
 0xe5a   :  { %v902_v53 = vpop.f32.mrf.mxu0 }
 0xe5b   :  { %v903_v54 = vadd.f32 %v2093_v46, %v902_v53  ;;  %v1735_v56 = vpop.f32.mrf.mxu1 }
 0xe5c   :  { %v1726_v57 = vpop.f32.mrf.mxu0 }
 0xe5d   :  { %1862 = vtanh.f32 %v903_v54 }
 0xe5e   :  { %v905_v58 = vpop.f32.mrf.mxu0 }
 0xe60   :  { %v1727_v59 = vpop.f32.mrf.mxu0 }
 0xe65   :  { %v1861_v60 = vpop.eup %1860 }
 0xe66   :  { %982 = vrot.lane.b32.xlu1 %v1861_v60, %s1913_s21  ;;  %v978_v44 = vmul.f32 0.5, %v1861_v60 }
 0xe68   :  { %v979_v62 = vadd.f32 0.5, %v978_v44 }
 0xe6a   :  { %v1863_v61 = vpop.eup %1862  ;;  %v980_v9 = vmul.f32 %v979_v62, %v2226_v25 }
 0xe6b   :  { %913 = vrot.lane.b32.xlu0 %v1863_v61, %s1913_s21  ;;  %v909_v0 = vmul.f32 0.5, %v1863_v61 }
 0xe6d   :  { %v910_v4 = vadd.f32 0.5, %v909_v0 }
 0xe6f   :  { %v911_v12 = vmul.f32 %v910_v4, %v2230_v27  ;;  %v170_v27 = vadd.f32 %v2081_v41, %v2012_v15 }
 0xed8   :  { %v983_v63 = vpop.permute.xlu1 %982 }
 0xed9   :  { %v985_v1 = vmul.f32 %v983_v63, %v979_v62 }
 0xedb   :  { %987 = vrot.lane.b32.xlu1 %v985_v1, %s1914_s22 }
 0xedd   :  { %v914_v7 = vpop.permute.xlu0 %913 }
 0xede   :  { %v916_v8 = vmul.f32 %v914_v7, %v910_v4 }
 0xee0   :  { %918 = vrot.lane.b32.xlu0 %v916_v8, %s1914_s22 }
 0xf4d   :  { %v988_v10 = vpop.permute.xlu1 %987 }
 0xf4e   :  { %v2268_v11 = vadd.f32 %v988_v10, %v980_v9 }
 0xf50   :  { %1864 = vtanh.f32 %v2268_v11 }
 0xf52   :  { %v919_v42 = vpop.permute.xlu0 %918 }
 0xf53   :  { %v2272_v13 = vadd.f32 %v919_v42, %v911_v12 }
 0xf55   :  { %1866 = vtanh.f32 %v2272_v13 }
 0xf5d   :  { %v1865_v16 = vpop.eup %1864 }
 0xf5e   :  { %993 = vrot.lane.b32.xlu1 %v1865_v16, %s1913_s21 }
 0xf62   :  { %v1867_v17 = vpop.eup %1866 }
 0xf63   :  { %924 = vrot.lane.b32.xlu0 %v1867_v17, %s1913_s21 }
 0xfd0   :  { %v994_v18 = vpop.permute.xlu1 %993 }
 0xfd1   :  { %v996_v20 = vmul.f32 %v994_v18, %v979_v62 }
 0xfd3   :  { %v997_v21 = vpack.c.bf16 %v996_v20, %v996_v20 }
 0xfd5   :  { %v925_v22 = vpop.permute.xlu0 %924  ;;  %999 = vrot.lane.b32.xlu0 %v997_v21, %s1914_s22 }
 0xfd6   :  { %v2278_v23 = vmul.f32 %v925_v22, %v910_v4 }
 0xfd8   :  { %v928_v24 = vpack.c.bf16 %v2278_v23, %v2278_v23 }
 0xfda   :  { %1002 = vrot.lane.b32.xlu1 %v928_v24, %s1913_s21 }
0x1047   :  { %v1000_v25 = vpop.permute.xlu0 %999 }
0x1048   :  { %1753 = vmatmul.mubr.msk.bf16.vlgmr.msra.gmra.mxu0 %vm207_vm2, %v1000_v25 }
0x1049   :  { %1757 = vmatpush3.bf16.msra.mxu0 %v2026_v28  ;;  %1764 = vmatprep.mubr.msk.bf16.mxu0 %vm1911_vm0, %v1910_v2 }
0x104a   :  { %1758 = vmatprep.subr.bf16.mxu0 %v1910_v2 }
0x104c   :  { %v1003_v26 = vpop.permute.xlu1 %1002 }
0x104d   :  { %v1006_v39 = vsel %vm207_vm2, %v1000_v25, %v1003_v26  ;;  %1759 = vmatpush3.bf16.msra.mxu0 %v2036_v30 }
0x104e   :  { %1745 = vmatmul.mubr.msk.bf16.vlgmr.msra.gmra.mxu1 %vm98_vm1, %v1006_v39  ;;  %1760 = vmatprep.subr.bf16.mxu0 %v1910_v2 }
0x104f   :  { %1769 = vmatpush3.bf16.msra.mxu1 %v1973_v3  ;;  %1772 = vmatprep.mubr.msk.bf16.mxu1 %vm1911_vm0, %v1910_v2 }
0x1050   :  { %1770 = vmatprep.subr.bf16.mxu1 %v1910_v2 }
0x1051   :  { %1761 = vmatpush3.bf16.msra.mxu0 %v2046_v31 }
0x1052   :  { %1762 = vmatprep.subr.bf16.mxu0 %v1910_v2 }
0x1053   :  { %1771 = vmatpush3.bf16.msra.mxu1 %v1984_v5 }
0x1054   :  { %1776 = vmatprep.subr.bf16.mxu1 %v1910_v2 }
0x1055   :  { %1763 = vmatpush3.bf16.msra.mxu0 %v2054_v33 }
0x1108   :  { %v1111_v29 = vpop.f32.mrf.mxu0 }
0x1109   :  { %v1117_v3 = vadd.f32 %v1111_v29, %v170_v27 }
0x110a   :  { %v1754_v32 = vpop.f32.mrf.mxu0 }
0x110b   :  { %1868 = vtanh.f32 %v1117_v3 }
0x110c   :  { %v1114_v34 = vpop.f32.mrf.mxu0 }
0x110e   :  { %v1043_v35 = vpop.f32.mrf.mxu1  ;;  %v1755_v36 = vpop.f32.mrf.mxu0 }
0x110f   :  { %v1044_v37 = vadd.f32 %v2093_v46, %v1043_v35 }
0x1110   :  { %v1746_v40 = vpop.f32.mrf.mxu1 }
0x1111   :  { %1870 = vtanh.f32 %v1044_v37 }
0x1112   :  { %v1046_v45 = vpop.f32.mrf.mxu1 }
0x1114   :  { %v1747_v5 = vpop.f32.mrf.mxu1 }
0x1118   :  { %v1869_v47 = vpop.eup %1868 }
0x1119   :  { %1123 = vrot.lane.b32.xlu1 %v1869_v47, %s1913_s21  ;;  %v1119_v41 = vmul.f32 0.5, %v1869_v47 }
0x111b   :  { %v1120_v48 = vadd.f32 0.5, %v1119_v41 }
0x111d   :  { %v1121_v56 = vmul.f32 %v1120_v48, %v2268_v11 }
0x111e   :  { %v1871_v14 = vpop.eup %1870 }
0x111f   :  { %1054 = vrot.lane.b32.xlu0 %v1871_v14, %s1913_s21  ;;  %v1050_v51 = vmul.f32 0.5, %v1871_v14 }
0x1121   :  { %v1051_v52 = vadd.f32 0.5, %v1050_v51 }
0x1123   :  { %v1052_v59 = vmul.f32 %v1051_v52, %v2272_v13 }
0x118b   :  { %v1124_v49 = vpop.permute.xlu1 %1123 }
0x118c   :  { %v1126_v50 = vmul.f32 %v1124_v49, %v1120_v48 }
0x118e   :  { %1128 = vrot.lane.b32.xlu1 %v1126_v50, %s1914_s22 }
0x1191   :  { %v1055_v53 = vpop.permute.xlu0 %1054 }
0x1192   :  { %v1057_v54 = vmul.f32 %v1055_v53, %v1051_v52 }
0x1194   :  { %1059 = vrot.lane.b32.xlu0 %v1057_v54, %s1914_s22 }
0x1200   :  { %v1129_v57 = vpop.permute.xlu1 %1128 }
0x1201   :  { %v1131_v58 = vadd.f32 %v1129_v57, %v1121_v56 }
0x1203   :  { %1872 = vtanh.f32 %v1131_v58 }
0x1206   :  { %v1060_v60 = vpop.permute.xlu0 %1059 }
0x1207   :  { %v1062_v61 = vadd.f32 %v1060_v60, %v1052_v59 }
0x1209   :  { %1874 = vtanh.f32 %v1062_v61 }
0x1210   :  { %v1873_v44 = vpop.eup %1872 }
0x1211   :  { %1134 = vrot.lane.b32.xlu1 %v1873_v44, %s1913_s21 }
0x1216   :  { %v1875_v62 = vpop.eup %1874 }
0x1217   :  { %1065 = vrot.lane.b32.xlu0 %v1875_v62, %s1913_s21 }
0x1283   :  { %v1135_v63 = vpop.permute.xlu1 %1134 }
0x1284   :  { %v1137_v0 = vmul.f32 %v1135_v63, %v1120_v48 }
0x1286   :  { %v1138_v1 = vpack.c.bf16 %v1137_v0, %v1137_v0 }
0x1288   :  { %1140 = vrot.lane.b32.xlu0 %v1138_v1, %s1914_s22 }
0x1289   :  { %v1066_v4 = vpop.permute.xlu0 %1065 }
0x128a   :  { %v2313_v7 = vmul.f32 %v1066_v4, %v1051_v52 }
0x128c   :  { %v1069_v8 = vpack.c.bf16 %v2313_v7, %v2313_v7 }
0x128e   :  { %1143 = vrot.lane.b32.xlu1 %v1069_v8, %s1913_s21  ;;  %v1823_v8 = vld [vmem:[%s2399_s6] sm:$0xff]  }
0x12fa   :  { %v1141_v9 = vpop.permute.xlu0 %1140 }
0x12fb   :  { %1773 = vmatmul.mubr.msk.bf16.vlgmr.msra.gmra.mxu1 %vm207_vm2, %v1141_v9 }
0x12fc   :  { %1777 = vmatpush3.bf16.msra.mxu1 %v2026_v28  ;;  %1784 = vmatprep.mubr.msk.bf16.mxu1 %vm1911_vm0, %v1910_v2  ;;  %v173_v28 = vadd.f32 %v2085_v43, %v2012_v15 }
0x12fd   :  { %1778 = vmatprep.subr.bf16.mxu1 %v1910_v2 }
0x1300   :  { %v1144_v10 = vpop.permute.xlu1 %1143  ;;  %1779 = vmatpush3.bf16.msra.mxu1 %v2036_v30 }
0x1301   :  { %v1147_v11 = vsel %vm207_vm2, %v1141_v9, %v1144_v10  ;;  %1780 = vmatprep.subr.bf16.mxu1 %v1910_v2 }
0x1302   :  { %1765 = vmatmul.mubr.msk.bf16.vlgmr.msra.gmra.mxu0 %vm98_vm1, %v1147_v11 }
0x1304   :  { %1781 = vmatpush3.bf16.msra.mxu1 %v2046_v31 }
0x1305   :  { %1782 = vmatprep.subr.bf16.mxu1 %v1910_v2 }
0x1308   :  { %1783 = vmatpush3.bf16.msra.mxu1 %v2054_v33 }
0x13bb   :  { %v1252_v12 = vpop.f32.mrf.mxu1 }
0x13bc   :  { %v1258_v42 = vadd.f32 %v1252_v12, %v173_v28 }
0x13bd   :  { %v1774_v13 = vpop.f32.mrf.mxu1 }
0x13be   :  { %1876 = vtanh.f32 %v1258_v42 }
0x13bf   :  { %v1255_v30 = vpop.f32.mrf.mxu1 }
0x13c1   :  { %v1775_v16 = vpop.f32.mrf.mxu1 }
0x13c2   :  { %v1184_v17 = vpop.f32.mrf.mxu0 }
0x13c3   :  { %v1185_v18 = vadd.f32 %v2093_v46, %v1184_v17 }
0x13c4   :  { %v1766_v20 = vpop.f32.mrf.mxu0 }
0x13c5   :  { %1878 = vtanh.f32 %v1185_v18 }
0x13c6   :  { %v1187_v21 = vpop.f32.mrf.mxu0 }
0x13c8   :  { %v1767_v31 = vpop.f32.mrf.mxu0 }
0x13cb   :  { %v1877_v22 = vpop.eup %1876 }
0x13cc   :  { %1264 = vrot.lane.b32.xlu1 %v1877_v22, %s1913_s21  ;;  %v1260_v15 = vmul.f32 0.5, %v1877_v22 }
0x13ce   :  { %v1261_v33 = vadd.f32 0.5, %v1260_v15 }
0x13d0   :  { %v1262_v29 = vmul.f32 %v1261_v33, %v1131_v58 }
0x13d2   :  { %v1879_v2 = vpop.eup %1878 }
0x13d3   :  { %1195 = vrot.lane.b32.xlu0 %v1879_v2, %s1913_s21  ;;  %v1191_v25 = vmul.f32 0.5, %v1879_v2  ;;  %v1527_v2 = vld [vmem:[%s2400_s7] ss:$0 sm:$0xff]  ;;  %s1915_s7 = smov [#allocation3]  }
0x13d4   :  { %s1481_s16 = sshll.u32 %s1915_s7, 4  ;;  %s1482_s16 = int_to_ptr.vmem [resolvable:$true] %s1481_s16 }
0x13d5   :  { %v1192_v26 = vadd.f32 0.5, %v1191_v25  ;;  %s1888_s17 = scalar_lea.vmem %s1482_s16, 1024  ;;  %p1893_p1 = scmp.lt.s32.totalorder %s1482_s16, %s1482_s16 }
0x13d6   :  { %p1889_p0 = scmp.ne.s32.totalorder %s1482_s16, %s1888_s17  ;;  %p1894_p2 = scmp.lt.s32.totalorder %s1888_s17, %s1888_s17 }
0x13d7   :  { %v1193_v34 = vmul.f32 %v1192_v26, %v1062_v61 }
0x13d8   :  { %p1895_p3 = por %p1894_p2, %p1893_p1 }
0x13da   :  { %p1896_p4 = pnand %p1895_p3, %p1889_p0 }
0x143e   :  { %v1265_v43 = vpop.permute.xlu1 %1264 }
0x143f   :  { %v1267_v24 = vmul.f32 %v1265_v43, %v1261_v33 }
0x1441   :  { %1269 = vrot.lane.b32.xlu1 %v1267_v24, %s1914_s22 }
0x1445   :  { %v1196_v39 = vpop.permute.xlu0 %1195 }
0x1446   :  { %v1198_v27 = vmul.f32 %v1196_v39, %v1192_v26 }
0x1448   :  { %1200 = vrot.lane.b32.xlu0 %v1198_v27, %s1914_s22 }
0x14b3   :  { %v1270_v3 = vpop.permute.xlu1 %1269 }
0x14b4   :  { %v1272_v32 = vadd.f32 %v1270_v3, %v1262_v29 }
0x14b6   :  { %1880 = vtanh.f32 %v1272_v32 }
0x14ba   :  { %v1201_v35 = vpop.permute.xlu0 %1200 }
0x14bb   :  { %v1203_v36 = vadd.f32 %v1201_v35, %v1193_v34 }
0x14bd   :  { %1882 = vtanh.f32 %v1203_v36 }
0x14c3   :  { %v1881_v37 = vpop.eup %1880 }
0x14c4   :  { %1275 = vrot.lane.b32.xlu1 %v1881_v37, %s1913_s21 }
0x14ca   :  { %v1883_v40 = vpop.eup %1882 }
0x14cb   :  { %1206 = vrot.lane.b32.xlu0 %v1883_v40, %s1913_s21 }
0x1536   :  { %v1276_v45 = vpop.permute.xlu1 %1275 }
0x1537   :  { %v1278_v5 = vmul.f32 %v1276_v45, %v1261_v33 }
0x1539   :  { %v1279_v47 = vpack.c.bf16 %v1278_v5, %v1278_v5 }
0x153b   :  { %1281 = vrot.lane.b32.xlu0 %v1279_v47, %s1914_s22 }
0x153d   :  { %v1207_v14 = vpop.permute.xlu0 %1206 }
0x153e   :  { %v1209_v41 = vmul.f32 %v1207_v14, %v1192_v26 }
0x1540   :  { %v1210_v48 = vpack.c.bf16 %v1209_v41, %v1209_v41 }
0x1542   :  { %1284 = vrot.lane.b32.xlu1 %v1210_v48, %s1913_s21 }
0x15ad   :  { %v1282_v49 = vpop.permute.xlu0 %1281 }
0x15b4   :  { %v1285_v50 = vpop.permute.xlu1 %1284 }
0x15b5   :  { %v1288_v51 = vsel %vm207_vm2, %v1282_v49, %v1285_v50 }
0x15b6   :  { %1785 = vmatmul.mubr.msk.bf16.vlgmr.msra.gmra.mxu1 %vm98_vm1, %v1288_v51 }
0x1676   :  { %v1325_v52 = vpop.f32.mrf.mxu1 }
0x1677   :  { %v1326_v53 = vadd.f32 %v2093_v46, %v1325_v52 }
0x1678   :  { %v1786_v54 = vpop.f32.mrf.mxu1 }
0x1679   :  { %1884 = vtanh.f32 %v1326_v53 }
0x167a   :  { %v1328_v56 = vpop.f32.mrf.mxu1 }
0x167c   :  { %v1787_v57 = vpop.f32.mrf.mxu1 }
0x1686   :  { %v1885_v58 = vpop.eup %1884 }
0x1687   :  { %1336 = vrot.lane.b32.xlu0 %v1885_v58, %s1913_s21  ;;  %v1332_v59 = vmul.f32 0.5, %v1885_v58 }
0x1689   :  { %v1333_v60 = vadd.f32 0.5, %v1332_v59 }
0x168b   :  { %v1334_v46 = vmul.f32 %v1333_v60, %v1203_v36 }
0x16f9   :  { %v1337_v61 = vpop.permute.xlu0 %1336 }
0x16fa   :  { %v1339_v44 = vmul.f32 %v1337_v61, %v1333_v60 }
0x16fc   :  { %1341 = vrot.lane.b32.xlu1 %v1339_v44, %s1914_s22 }
0x1700   :  { %366 = vrot.lane.b32.xlu1 %v2109_v19, %s1914_s22  ;;  %v1822_v19 = vld [vmem:[%s2399_s6 + $0x8] sm:$0xff]  }
0x1701   :  { %1788 = vmatprep.subr.bf16.mxu0 %v1822_v19 }
0x1702   :  { %1789 = vmatpush3.bf16.msra.mxu0 %v1822_v19 }
0x1703   :  { %1790 = vmatprep.subr.bf16.mxu0 %v1823_v8 }
0x1704   :  { %648 = vrot.lane.b32.xlu1 %v2193_v55, %s1914_s22 }
0x1706   :  { %1791 = vmatpush3.bf16.msra.mxu0 %v1823_v8 }
0x1708   :  { %930 = vrot.lane.b32.xlu1 %v2278_v23, %s1914_s22 }
0x170c   :  { %1212 = vrot.lane.b32.xlu1 %v1209_v41, %s1914_s22 }
0x176e   :  { %v1342_v62 = vpop.permute.xlu1 %1341 }
0x176f   :  { %v1344_v63 = vadd.f32 %v1342_v62, %v1334_v46 }
0x1771   :  { %1886 = vtanh.f32 %v1344_v63 }
0x1772   :  { %v367_v0 = vpop.permute.xlu1 %366 }
0x1773   :  { %369 = vst.msk [vmem:[#allocation2] sm:$0xff] %vm207_vm2, %v367_v0 }
0x1776   :  { %v649_v1 = vpop.permute.xlu1 %648 }
0x1777   :  { %651 = vst.msk [vmem:[#allocation2 + $0x10] sm:$0xff] %vm207_vm2, %v649_v1 }
0x177a   :  { %v931_v4 = vpop.permute.xlu1 %930  ;;  %v1356_v42 = vld [vmem:[#allocation2] sm:$0xff] }
0x177b   :  { %933 = vst.msk [vmem:[#allocation2 + $0x20] sm:$0xff] %vm207_vm2, %v931_v4 }
0x177e   :  { %v1887_v55 = vpop.eup %1886  ;;  %v1213_v23 = vpop.permute.xlu1 %1212 }
0x177f   :  { %1215 = vst.msk [vmem:[#allocation2 + $0x30] sm:$0xff] %vm207_vm2, %v1213_v23  ;;  %1347 = vrot.lane.b32.xlu0 %v1887_v55, %s1913_s21 }
0x1782   :  { %v1360_v16 = vld [vmem:[#allocation2 + $0x20] sm:$0xff] }
0x1783   :  { %507 = vrot.lane.b32.xlu0 %v2151_v6, %s1914_s22 }
0x1786   :  { %v1362_v21 = vld [vmem:[#allocation2 + $0x30] sm:$0xff] }
0x1787   :  { %789 = vrot.lane.b32.xlu0 %v2235_v38, %s1914_s22  ;;  %v1358_v38 = vld [vmem:[#allocation2 + $0x10] sm:$0xff] }
0x178b   :  { %1071 = vrot.lane.b32.xlu0 %v2313_v7, %s1914_s22 }
0x17f1   :  { %v1348_v9 = vpop.permute.xlu0 %1347 }
0x17f2   :  { %v1350_v10 = vmul.f32 %v1348_v9, %v1333_v60 }
0x17f4   :  { %1352 = vrot.lane.b32.xlu0 %v1350_v10, %s1914_s22 }
0x17f5   :  { %v508_v11 = vpop.permute.xlu0 %507 }
0x17f6   :  { %510 = vst.msk [vmem:[#allocation2 + $0x8] sm:$0xff] %vm207_vm2, %v508_v11 }
0x17f9   :  { %v790_v28 = vpop.permute.xlu0 %789 }
0x17fa   :  { %792 = vst.msk [vmem:[#allocation2 + $0x18] sm:$0xff] %vm207_vm2, %v790_v28 }
0x17fd   :  { %v1072_v12 = vpop.permute.xlu0 %1071  ;;  %v1357_v13 = vld [vmem:[#allocation2 + $0x8] sm:$0xff] }
0x17fe   :  { %1074 = vst.msk [vmem:[#allocation2 + $0x28] sm:$0xff] %vm207_vm2, %v1072_v12  ;;  %v1364_v6 = vpack.c.bf16 %v1357_v13, %v1356_v42 }
0x1800   :  { %1792 = vmatprep.mubr.msk.bf16.mxu0 %vm207_vm2, %v1364_v6 }
0x1801   :  { %v1359_v7 = vld [vmem:[#allocation2 + $0x18] sm:$0xff] }
0x1802   :  { %v1365_v30 = vpack.c.bf16 %v1359_v7, %v1358_v38 }
0x1804   :  { %1793 = vmatmul.mubr.msk.bf16.vlgmr.msra.gmra.mxu0 %vm207_vm2, %v1365_v30 }
0x1805   :  { %v1361_v17 = vld [vmem:[#allocation2 + $0x28] sm:$0xff] }
0x1806   :  { %v1366_v18 = vpack.c.bf16 %v1361_v17, %v1360_v16 }
0x1808   :  { %1796 = vmatprep.mubr.msk.bf16.mxu0 %vm207_vm2, %v1366_v18 }
0x1866   :  { %v1353_v20 = vpop.permute.xlu0 %1352 }
0x1867   :  { %1355 = vst.msk [vmem:[#allocation2 + $0x38] sm:$0xff] %vm207_vm2, %v1353_v20 }
0x186e   :  { %v1363_v31 = vld [vmem:[#allocation2 + $0x38] sm:$0xff] }
0x186f   :  { %v1367_v22 = vpack.c.bf16 %v1363_v31, %v1362_v21 }
0x1871   :  { %1797 = vmatmul.mubr.msk.bf16.gmra.mxu0 %vm207_vm2, %v1367_v22 }
0x18c4   :  { %v1794_v15 = vpop.f32.mrf.mxu0 }
0x18c5   :  { %v1446_v33 = vadd.f32 %v1794_v15, %v1527_v2 }
0x18c6   :  { %v1437_v43 = vpop.f32.mrf.mxu0 }
0x18c7   :  { %1470 = vst.msk [vmem:[#allocation3 + $0x10] sm:$0xff] %vm98_vm1, %v1446_v33  ;;  %v1438_v24 = vadd.f32 %v1527_v2, %v1437_v43 }
0x18c8   :  { %v1795_v25 = vpop.f32.mrf.mxu0 }
0x18c9   :  { %1468 = vst.msk [vmem:[#allocation3] sm:$0xff] %vm98_vm1, %v1438_v24  ;;  %v1449_v26 = vadd.f32 %v1795_v25, %v1527_v2 }
0x18ca   :  { %v1440_v39 = vpop.f32.mrf.mxu0 }
0x18cb   :  { %1471 = vst.msk [vmem:[#allocation3 + $0x18] sm:$0xff] %vm98_vm1, %v1449_v26  ;;  %v1441_v27 = vadd.f32 %v1527_v2, %v1440_v39 }
0x18cd   :  { %1469 = vst.msk [vmem:[#allocation3 + $0x8] sm:$0xff] %vm98_vm1, %v1441_v27 }
0x1931   :  { %v1798_v29 = vpop.f32.mrf.mxu0 }
0x1932   :  { %v1462_v3 = vadd.f32 %v1798_v29, %v1527_v2 }
0x1933   :  { %v1453_v32 = vpop.f32.mrf.mxu0 }
0x1934   :  { %1474 = vst.msk [vmem:[#allocation3 + $0x30] sm:$0xff] %vm98_vm1, %v1462_v3  ;;  %v1454_v34 = vadd.f32 %v1527_v2, %v1453_v32 }
0x1935   :  { %v1799_v35 = vpop.f32.mrf.mxu0 }
0x1936   :  { %1472 = vst.msk [vmem:[#allocation3 + $0x20] sm:$0xff] %vm98_vm1, %v1454_v34  ;;  %v1465_v36 = vadd.f32 %v1799_v35, %v1527_v2 }
0x1937   :  { %v1456_v37 = vpop.f32.mrf.mxu0 }
0x1938   :  { %1475 = vst.msk [vmem:[#allocation3 + $0x38] sm:$0xff] %vm98_vm1, %v1465_v36  ;;  %v1457_v40 = vadd.f32 %v1527_v2, %v1456_v37 }
0x193a   :  { %1473 = vst.msk [vmem:[#allocation3 + $0x28] sm:$0xff] %vm98_vm1, %v1457_v40 }
0x193b   :  { %1899 = shalt.err (!%p1896_p4)
}
0x193c   :  { %s1916_s18 = smov 128   ;;  %s1917_s2 = smov 8  }
0x193d   :  { %1487 = dma.vmem_to_hbm [thread:$0]  %s1482_s16, 1024, %s2401_s8, [#allocation4], %s1916_s18, %s1916_s18, %s1917_s2  }
0x193e   :  { %1908 = dma.done.wait [#allocation4], 1024  }
0x193f   :  { %1909 = vsyncadd [#allocation4], 4294966272 }
0x1940   :  { %1491 = vsyncpa [#allocation4], 1 }

</bundles_post_ra>
